<compile_context>
chip_gen: v7x
topology: tpu7x:2x2x1
jax: 0.10.0
libtpu: 0.0.40
codegen_flags: <defaults>
</compile_context>

<pallas_src>
import numpy as np
import jax
import jax.numpy as jnp
from jax.experimental import pallas as pl
from jax.experimental.pallas import tpu as pltpu

H1, H2 = 80, 40          # DIEN scoring-MLP hidden sizes (from the torch spec)
H1P, H2P = 128, 128      # lane-padded hidden sizes


# --------------------------------------------------------------------------- #
# Kernel
# --------------------------------------------------------------------------- #
def attention_kernel(query_ref, facts_ref, mask_ref,
                     wq_ref, bq_ref, w1_ref, b1_ref,
                     w2_ref, b2_ref, w3_ref,
                     alpha_ref, b3_ref,
                     out_ref, scores_ref):
    TB, T, F = facts_ref.shape
    rows = TB * T
    cdt = facts_ref.dtype                     # MXU input dtype (f32 or bf16)
    h2p = w2_ref.shape[1]

    # ---- query dense + PReLU (computed once per batch row) ------------------
    q = jnp.dot(query_ref[...], wq_ref[...],
                preferred_element_type=jnp.float32) + bq_ref[...]       # [TB, F]
    alpha = alpha_ref[0, 0]                                             # SMEM scalar
    q = jnp.where(q >= 0.0, q, alpha * q)                               # PReLU(0.1)
    q_c = q.astype(cdt)

    # ---- scoring MLP ---------------------------------------------------------
    facts = facts_ref[...]                                              # [TB, T, F]
    f2 = facts.reshape(rows, F)                # merge leading dims: layout no-op
    q_b = jnp.broadcast_to(q_c[:, None, :], (TB, T, F)).reshape(rows, F)

    # Layer 1 as one lane-dense K = 4F matmul (original concat form).
    din = jnp.concatenate([q_b, f2, q_b - f2, q_b * f2], axis=-1)       # [rows, 4F]
    d1 = jax.nn.sigmoid(
        jnp.dot(din, w1_ref[...], preferred_element_type=jnp.float32)
        + b1_ref[...])                                                  # [rows, H1P]
    d2 = jax.nn.sigmoid(
        jnp.dot(d1.astype(cdt), w2_ref[...], preferred_element_type=jnp.float32)
        + b2_ref[...])                                                  # [rows, H2P]

    # Final Linear(H2, 1) as mul + lane reduce.  Padded lanes of w3 (and zero
    # pad rows/cols of w2) keep the lane padding numerically inert.
    scores = jnp.sum(d2.reshape(TB, T, h2p) * w3_ref[...], axis=-1) + b3_ref[0, 0]

    # ---- mask + softmax over the sequence dim --------------------------------
    neg = jnp.float32(-2.0 ** 32 + 1)
    scores = jnp.where(mask_ref[...] != 0, scores, neg)
    m = jnp.max(scores, axis=-1, keepdims=True)
    e = jnp.exp(scores - m)
    scores = e / jnp.sum(e, axis=-1, keepdims=True)     # exact: denom is [TB, 1]

    scores_ref[...] = scores.astype(scores_ref.dtype)
    out_ref[...] = (facts * scores[:, :, None]).astype(out_ref.dtype)


# --------------------------------------------------------------------------- #
# Tiling / VMEM model
# --------------------------------------------------------------------------- #
def _round_up(x, m):
    return ((x + m - 1) // m) * m


def _vmem_capacity_bytes():
    """Physical VMEM per TensorCore (64 MiB on v7x, 128 MiB on v5e/v6e)."""
    try:
        cap = getattr(pltpu.get_tpu_info(), "vmem_capacity_bytes", None)
        if cap:
            return int(cap)
    except Exception:
        pass
    return 128 << 20


def _tile_vmem_bytes(tb, t, f, q, compute_dtype):
    """Lane-padded VMEM footprint of one batch tile: pipeline inputs/outputs
    double-buffered, in-kernel temporaries counted single-buffered with no
    reuse assumed (conservative)."""
    isz = jnp.dtype(compute_dtype).itemsize
    fpad, tpad, qpad = _round_up(f, 128), _round_up(t, 128), _round_up(q, 128)
    dinp = _round_up(4 * f, 128)
    rows = tb * t
    b = 2 * rows * fpad * isz              # facts tile (double-buffered)
    b += 2 * rows * fpad * 4               # out tile, f32 (double-buffered)
    b += 2 * tb * qpad * isz               # query tile
    b += 4 * tb * tpad * 4                 # mask tile + scores tile
    b += rows * (3 * fpad + dinp) * isz    # q_bcast, q-f, q*f, din
    b += rows * 2 * 128 * 4                # d1, d2 (f32, lane-padded hidden)
    b += rows * fpad * 4                   # f32 output product
    return b


def _choose_batch_tile(B, T, F, Q, compute_dtype, vmem_cap):
    """Largest power-of-two batch tile inside a generation-gated VMEM budget,
    capped at ~4K rows, then shrunk (not below ~256 rows) so the grid keeps
    enough steps per TensorCore to pipeline the facts/out DMAs."""
    small_vmem = vmem_cap <= (64 << 20)                  # v7x-class part
    tile_budget = (14 << 20) if small_vmem else (28 << 20)
    max_rows = 4096
    tb = 1
    while (2 * tb * T <= max_rows
           and _tile_vmem_bytes(2 * tb, T, F, Q, compute_dtype) <= tile_budget):
        tb *= 2
    tb = min(tb, B)
    min_steps = 8 if small_vmem else 3                   # v7x shards grid over 2 TCs
    if -(-B // tb) < min_steps:
        floor_tb = max(1, min(B, 256 // max(T, 1)))      # big tiles first
        tb = min(B, max(floor_tb, -(-B // min_steps)))
    return tb


def _prepare_kernel_params(params, F, compute_dtype):
    """Pad hidden dims to 128 lanes; keep the padding numerically inert
    (zero w1/w2 pad columns, zero w2 pad rows, zero w3 pad lanes)."""
    cdt = compute_dtype

    def pad_cols(x, n):
        return jnp.pad(x, ((0, 0), (0, n - x.shape[1])))

    def pad_rows(x, n):
        return jnp.pad(x, ((0, n - x.shape[0]), (0, 0)))

    return {
        "wq": params["wq"].astype(cdt),
        "bq": params["bq"].astype(jnp.float32),
        "w1": pad_cols(params["w1"], H1P).astype(cdt),               # [4F, H1P]
        "b1": pad_cols(params["b1"], H1P).astype(jnp.float32),
        "w2": pad_cols(pad_rows(params["w2"], H1P), H2P).astype(cdt),
        "b2": pad_cols(params["b2"], H2P).astype(jnp.float32),
        "w3": pad_cols(params["w3"].T, H2P).astype(jnp.float32),     # [1, H2P]
        "alpha": params["alpha"].reshape(1, 1).astype(jnp.float32),
        "b3": params["b3"].reshape(1, 1).astype(jnp.float32),
    }


# --------------------------------------------------------------------------- #
# Wrapper
# --------------------------------------------------------------------------- #
def attention_forward(query, facts, mask, params, *,
                      batch_tile=None, compute_dtype=jnp.float32):
    B, Q = query.shape
    Bf, T, F = facts.shape
    assert Bf == B and mask.shape == (B, T)

    vmem_cap = _vmem_capacity_bytes()
    p = _prepare_kernel_params(params, F, compute_dtype)

    TB = int(batch_tile) if batch_tile is not None else \
        _choose_batch_tile(B, T, F, Q, compute_dtype, vmem_cap)
    Bp = pl.cdiv(B, TB) * TB             # pad awkward batch sizes to a tile multiple
    nb = Bp // TB

    query_c = query.astype(compute_dtype)
    facts_c = facts.astype(compute_dtype)
    mask_i = mask.astype(jnp.int32)
    if Bp != B:
        pad = Bp - B
        query_c = jnp.pad(query_c, ((0, pad), (0, 0)))
        facts_c = jnp.pad(facts_c, ((0, pad), (0, 0), (0, 0)))
        mask_i = jnp.pad(mask_i, ((0, pad), (0, 0)))   # fully-masked rows stay finite

    # Scoped-VMEM limit: lane-padded tile footprint + (double-buffered) weights,
    # clamped per generation (<= 40 MiB on 64-MiB v7x, <= 100 MiB on v5e/v6e).
    isz = jnp.dtype(compute_dtype).itemsize
    weight_bytes = 2 * (Q * 128 + 4 * F * H1P + H1P * H2P + 4 * 128) * isz + (256 << 10)
    tile_bytes = _tile_vmem_bytes(TB, T, F, Q, compute_dtype) + weight_bytes
    gen_cap = (40 << 20) if vmem_cap <= (64 << 20) else (100 << 20)
    vmem_limit = int(min(gen_cap, max(16 << 20, tile_bytes + (4 << 20))))

    kernel = pl.pallas_call(
        attention_kernel,
        out_shape=(jax.ShapeDtypeStruct((Bp, T, F), jnp.float32),
                   jax.ShapeDtypeStruct((Bp, T), jnp.float32)),
        grid=(nb,),
        in_specs=[
            pl.BlockSpec((TB, Q), lambda b: (b, 0)),              # query
            pl.BlockSpec((TB, T, F), lambda b: (b, 0, 0)),        # facts
            pl.BlockSpec((TB, T), lambda b: (b, 0)),              # mask
            pl.BlockSpec((Q, F), lambda b: (0, 0)),               # wq
            pl.BlockSpec((1, F), lambda b: (0, 0)),               # bq
            pl.BlockSpec((4 * F, H1P), lambda b: (0, 0)),         # w1 (col-padded)
            pl.BlockSpec((1, H1P), lambda b: (0, 0)),             # b1
            pl.BlockSpec((H1P, H2P), lambda b: (0, 0)),           # w2 (padded)
            pl.BlockSpec((1, H2P), lambda b: (0, 0)),             # b2
            pl.BlockSpec((1, H2P), lambda b: (0, 0)),             # w3 (padded)
            pl.BlockSpec(memory_space=pltpu.MemorySpace.SMEM),    # alpha (scalar)
            pl.BlockSpec(memory_space=pltpu.MemorySpace.SMEM),    # b3    (scalar)
        ],
        out_specs=(pl.BlockSpec((TB, T, F), lambda b: (b, 0, 0)),
                   pl.BlockSpec((TB, T), lambda b: (b, 0))),
        compiler_params=pltpu.CompilerParams(
            dimension_semantics=("parallel",),     # megacore-shardable (v7x: 2 TCs)
            vmem_limit_bytes=vmem_limit),
    )
    out, scores = kernel(query_c, facts_c, mask_i,
                         p["wq"], p["bq"], p["w1"], p["b1"],
                         p["w2"], p["b2"], p["w3"], p["alpha"], p["b3"])
    if Bp != B:
        out, scores = out[:B], scores[:B]
    return out, scores


# --------------------------------------------------------------------------- #
# Parameters + pure-JAX reference (PyTorch semantics)
# --------------------------------------------------------------------------- #
def make_params(key, query_size, fact_size, h1=H1, h2=H2):
    """Deterministic synthetic init (PyTorch Linear-style uniform ±1/sqrt(fan_in))."""
    ks = jax.random.split(key, 8)

    def lin(kw, kb, fan_in, fan_out):
        bound = 1.0 / np.sqrt(fan_in)
        w = jax.random.uniform(kw, (fan_in, fan_out), jnp.float32, -bound, bound)
        b = jax.random.uniform(kb, (1, fan_out), jnp.float32, -bound, bound)
        return w, b

    wq, bq = lin(ks[0], ks[1], query_size, fact_size)
    w1, b1 = lin(ks[2], ks[3], 4 * fact_size, h1)
    w2, b2 = lin(ks[4], ks[5], h1, h2)
    w3, b3 = lin(ks[6], ks[7], h2, 1)
    return {
        "wq": wq, "bq": bq,
        "alpha": jnp.full((1, 1), 0.1, jnp.float32),   # PReLU(init=0.1), one param
        "w1": w1, "b1": b1,
        "w2": w2, "b2": b2,
        "w3": w3,                                      # [h2, 1]
        "b3": b3.reshape(1, 1),
    }


def reference_forward(query, facts, mask, p):
    hi = jax.lax.Precision.HIGHEST
    q = jnp.dot(query, p["wq"], precision=hi) + p["bq"][0]
    q = jnp.where(q >= 0.0, q, p["alpha"][0, 0] * q)
    queries = jnp.broadcast_to(q[:, None, :], facts.shape)
    din = jnp.concatenate([queries, facts, queries - facts, queries * facts], -1)
    d1 = jax.nn.sigmoid(jnp.dot(din, p["w1"], precision=hi) + p["b1"][0])
    d2 = jax.nn.sigmoid(jnp.dot(d1, p["w2"], precision=hi) + p["b2"][0])
    sc = jnp.dot(d2, p["w3"], precision=hi)[..., 0] + p["b3"][0, 0]
    sc = jnp.where(mask != 0, sc, jnp.float32(-2.0 ** 32 + 1))
    sc = jax.nn.softmax(sc, axis=-1)
    out = facts * sc[..., None]
    return out, sc


# --------------------------------------------------------------------------- #
# Test harness
# --------------------------------------------------------------------------- #
if __name__ == "__main__":
    B, T = 64, 8
    QUERY_SIZE, FACT_SIZE = 16, 32

    key = jax.random.PRNGKey(0)
    k_q, k_f, k_m, k_p = jax.random.split(key, 4)

    query = jax.random.normal(k_q, (B, QUERY_SIZE), jnp.float32)
    facts = jax.random.normal(k_f, (B, T, FACT_SIZE), jnp.float32)
    mask = jax.random.bernoulli(k_m, 0.7, (B, T)).astype(jnp.int32)
    mask = mask.at[:, 0].set(1)          # at least one valid position per row

    params = make_params(k_p, QUERY_SIZE, FACT_SIZE)

    # f32 path (default)
    out, scores = attention_forward(query, facts, mask, params)
    jax.block_until_ready((out, scores))

    ref_out, ref_scores = reference_forward(query, facts, mask, params)
    np.testing.assert_allclose(np.asarray(scores), np.asarray(ref_scores),
                               rtol=2e-3, atol=2e-3)
    np.testing.assert_allclose(np.asarray(out), np.asarray(ref_out),
                               rtol=2e-3, atol=2e-3)

    # bf16 facts/weights path (bandwidth-bound v5e) — now checked vs reference.
    out16, scores16 = attention_forward(query, facts, mask, params,
                                        compute_dtype=jnp.bfloat16)
    jax.block_until_ready((out16, scores16))
    np.testing.assert_allclose(np.asarray(scores16), np.asarray(ref_scores),
                               rtol=3e-2, atol=3e-2)
    np.testing.assert_allclose(np.asarray(out16), np.asarray(ref_out),
                               rtol=3e-2, atol=3e-2)

    # Awkward batch size -> padded-batch path (B=23 not a multiple of the tile).
    Bo = 23
    out_o, scores_o = attention_forward(query[:Bo], facts[:Bo], mask[:Bo],
                                        params, batch_tile=16)
    jax.block_until_ready((out_o, scores_o))
    np.testing.assert_allclose(np.asarray(scores_o), np.asarray(ref_scores[:Bo]),
                               rtol=2e-3, atol=2e-3)
    np.testing.assert_allclose(np.asarray(out_o), np.asarray(ref_out[:Bo]),
                               rtol=2e-3, atol=2e-3)

    print("KERNEL_OK")
</pallas_src>

<mosaic_0001>
module attributes {stable_mosaic.version = 11 : i64} {
  func.func @attention_kernel(%arg0: i32, %arg1: memref<32x16xf32, #tpu.memory_space<vmem>>, %arg2: memref<32x8x32xf32, #tpu.memory_space<vmem>>, %arg3: memref<32x8xi32, #tpu.memory_space<vmem>>, %arg4: memref<16x32xf32, #tpu.memory_space<vmem>>, %arg5: memref<1x32xf32, #tpu.memory_space<vmem>>, %arg6: memref<128x128xf32, #tpu.memory_space<vmem>>, %arg7: memref<1x128xf32, #tpu.memory_space<vmem>>, %arg8: memref<128x128xf32, #tpu.memory_space<vmem>>, %arg9: memref<1x128xf32, #tpu.memory_space<vmem>>, %arg10: memref<1x128xf32, #tpu.memory_space<vmem>>, %arg11: memref<1x1xf32, #tpu.memory_space<smem>>, %arg12: memref<1x1xf32, #tpu.memory_space<smem>>, %arg13: memref<32x8x32xf32, #tpu.memory_space<vmem>>, %arg14: memref<32x8xf32, #tpu.memory_space<vmem>>) attributes {dimension_semantics = [#tpu.dimension_semantics<parallel>], iteration_bounds = array<i64: 2>, scalar_prefetch = 0 : i64, scratch_operands = 0 : i64, tpu.core_type = #tpu.core_type<tc>, window_params = [{transform_indices = @transform_0, window_bounds = array<i64: 32, 16>}, {transform_indices = @transform_1, window_bounds = array<i64: 32, 8, 32>}, {transform_indices = @transform_2, window_bounds = array<i64: 32, 8>}, {pipeline_mode = #tpu.pipeline_mode<synchronous>, transform_indices = @transform_3, window_bounds = array<i64: 16, 32>}, {pipeline_mode = #tpu.pipeline_mode<synchronous>, transform_indices = @transform_4, window_bounds = array<i64: 1, 32>}, {pipeline_mode = #tpu.pipeline_mode<synchronous>, transform_indices = @transform_5, window_bounds = array<i64: 128, 128>}, {pipeline_mode = #tpu.pipeline_mode<synchronous>, transform_indices = @transform_6, window_bounds = array<i64: 1, 128>}, {pipeline_mode = #tpu.pipeline_mode<synchronous>, transform_indices = @transform_7, window_bounds = array<i64: 128, 128>}, {pipeline_mode = #tpu.pipeline_mode<synchronous>, transform_indices = @transform_8, window_bounds = array<i64: 1, 128>}, {pipeline_mode = #tpu.pipeline_mode<synchronous>, transform_indices = @transform_9, window_bounds = array<i64: 1, 128>}, {transform_indices = @transform_10, window_bounds = array<i64: 1, 1>}, {transform_indices = @transform_11, window_bounds = array<i64: 1, 1>}, {transform_indices = @transform_12, window_bounds = array<i64: 32, 8, 32>}, {transform_indices = @transform_13, window_bounds = array<i64: 32, 8>}]} {
    %c0 = arith.constant 0 : index
    %c0_0 = arith.constant 0 : index
    %0 = vector.load %arg1[%c0, %c0_0] : memref<32x16xf32, #tpu.memory_space<vmem>>, vector<32x16xf32>
    %c0_1 = arith.constant 0 : index
    %c0_2 = arith.constant 0 : index
    %1 = vector.load %arg4[%c0_1, %c0_2] : memref<16x32xf32, #tpu.memory_space<vmem>>, vector<16x32xf32>
    %cst = arith.constant dense<0.000000e+00> : vector<32x32xf32>
    %2 = tpu.matmul %0, %1, %cst {dimension_numbers = #tpu.dot_dimension_numbers<[1], [0], [0], [1], [0, 0, 1, 1], [], []>} : vector<32x16xf32>, vector<16x32xf32>, vector<32x32xf32> -> vector<32x32xf32>
    %c0_3 = arith.constant 0 : index
    %c0_4 = arith.constant 0 : index
    %3 = vector.load %arg5[%c0_3, %c0_4] : memref<1x32xf32, #tpu.memory_space<vmem>>, vector<1x32xf32>
    %4 = vector.broadcast %3 : vector<1x32xf32> to vector<32x32xf32>
    %5 = arith.addf %2, %4 : vector<32x32xf32>
    %c0_5 = arith.constant 0 : index
    %c0_6 = arith.constant 0 : index
    %6 = memref.load %arg11[%c0_5, %c0_6] : memref<1x1xf32, #tpu.memory_space<smem>>
    %cst_7 = arith.constant 0.000000e+00 : f32
    %7 = vector.broadcast %cst_7 : f32 to vector<32x32xf32>
    %8 = arith.cmpf oge, %5, %7 : vector<32x32xf32>
    %9 = vector.broadcast %6 : f32 to vector<32x32xf32>
    %10 = arith.mulf %9, %5 : vector<32x32xf32>
    %11 = arith.select %8, %5, %10 : vector<32x32xi1>, vector<32x32xf32>
    %c0_8 = arith.constant 0 : index
    %c0_9 = arith.constant 0 : index
    %c0_10 = arith.constant 0 : index
    %12 = vector.load %arg2[%c0_8, %c0_9, %c0_10] : memref<32x8x32xf32, #tpu.memory_space<vmem>>, vector<32x8x32xf32>
    %13 = vector.shape_cast %12 : vector<32x8x32xf32> to vector<256x32xf32>
    %14 = vector.shape_cast %11 : vector<32x32xf32> to vector<32x1x32xf32>
    %15 = vector.shape_cast %14 : vector<32x1x32xf32> to vector<32x1x32xf32>
    %16 = vector.broadcast %15 : vector<32x1x32xf32> to vector<32x8x32xf32>
    %17 = vector.shape_cast %16 : vector<32x8x32xf32> to vector<256x32xf32>
    %18 = arith.subf %17, %13 : vector<256x32xf32>
    %19 = arith.mulf %17, %13 : vector<256x32xf32>
    %20 = tpu.concatenate %17, %13, %18, %19 in 1 : vector<256x32xf32>, vector<256x32xf32>, vector<256x32xf32>, vector<256x32xf32> -> vector<256x128xf32>
    %c0_11 = arith.constant 0 : index
    %c0_12 = arith.constant 0 : index
    %21 = vector.load %arg6[%c0_11, %c0_12] : memref<128x128xf32, #tpu.memory_space<vmem>>, vector<128x128xf32>
    %cst_13 = arith.constant dense<0.000000e+00> : vector<256x128xf32>
    %22 = tpu.matmul %20, %21, %cst_13 {dimension_numbers = #tpu.dot_dimension_numbers<[1], [0], [0], [1], [0, 0, 1, 1], [], []>} : vector<256x128xf32>, vector<128x128xf32>, vector<256x128xf32> -> vector<256x128xf32>
    %c0_14 = arith.constant 0 : index
    %c0_15 = arith.constant 0 : index
    %23 = vector.load %arg7[%c0_14, %c0_15] : memref<1x128xf32, #tpu.memory_space<vmem>>, vector<1x128xf32>
    %24 = vector.broadcast %23 : vector<1x128xf32> to vector<256x128xf32>
    %25 = arith.addf %22, %24 : vector<256x128xf32>
    %26 = arith.negf %25 : vector<256x128xf32>
    %27 = math.exp %26 : vector<256x128xf32>
    %cst_16 = arith.constant 1.000000e+00 : f32
    %28 = vector.broadcast %cst_16 : f32 to vector<256x128xf32>
    %29 = arith.addf %28, %27 : vector<256x128xf32>
    %30 = arith.divf %28, %29 : vector<256x128xf32>
    %c0_17 = arith.constant 0 : index
    %c0_18 = arith.constant 0 : index
    %31 = vector.load %arg8[%c0_17, %c0_18] : memref<128x128xf32, #tpu.memory_space<vmem>>, vector<128x128xf32>
    %cst_19 = arith.constant dense<0.000000e+00> : vector<256x128xf32>
    %32 = tpu.matmul %30, %31, %cst_19 {dimension_numbers = #tpu.dot_dimension_numbers<[1], [0], [0], [1], [0, 0, 1, 1], [], []>} : vector<256x128xf32>, vector<128x128xf32>, vector<256x128xf32> -> vector<256x128xf32>
    %c0_20 = arith.constant 0 : index
    %c0_21 = arith.constant 0 : index
    %33 = vector.load %arg9[%c0_20, %c0_21] : memref<1x128xf32, #tpu.memory_space<vmem>>, vector<1x128xf32>
    %34 = vector.broadcast %33 : vector<1x128xf32> to vector<256x128xf32>
    %35 = arith.addf %32, %34 : vector<256x128xf32>
    %36 = arith.negf %35 : vector<256x128xf32>
    %37 = math.exp %36 : vector<256x128xf32>
    %cst_22 = arith.constant 1.000000e+00 : f32
    %38 = vector.broadcast %cst_22 : f32 to vector<256x128xf32>
    %39 = arith.addf %38, %37 : vector<256x128xf32>
    %40 = arith.divf %38, %39 : vector<256x128xf32>
    %41 = vector.shape_cast %40 : vector<256x128xf32> to vector<32x8x128xf32>
    %c0_23 = arith.constant 0 : index
    %c0_24 = arith.constant 0 : index
    %42 = vector.load %arg10[%c0_23, %c0_24] : memref<1x128xf32, #tpu.memory_space<vmem>>, vector<1x128xf32>
    %43 = vector.shape_cast %42 : vector<1x128xf32> to vector<1x1x128xf32>
    %44 = vector.broadcast %43 : vector<1x1x128xf32> to vector<32x8x128xf32>
    %45 = arith.mulf %41, %44 : vector<32x8x128xf32>
    %cst_25 = arith.constant dense<0.000000e+00> : vector<32x8xf32>
    %46 = vector.multi_reduction <add>, %45, %cst_25 [2] : vector<32x8x128xf32> to vector<32x8xf32>
    %c0_26 = arith.constant 0 : index
    %c0_27 = arith.constant 0 : index
    %47 = memref.load %arg12[%c0_26, %c0_27] : memref<1x1xf32, #tpu.memory_space<smem>>
    %48 = vector.broadcast %47 : f32 to vector<32x8xf32>
    %49 = arith.addf %46, %48 : vector<32x8xf32>
    %c0_28 = arith.constant 0 : index
    %c0_29 = arith.constant 0 : index
    %50 = vector.load %arg3[%c0_28, %c0_29] : memref<32x8xi32, #tpu.memory_space<vmem>>, vector<32x8xi32>
    %c0_i32 = arith.constant 0 : i32
    %51 = vector.broadcast %c0_i32 : i32 to vector<32x8xi32>
    %52 = arith.cmpi ne, %50, %51 : vector<32x8xi32>
    %cst_30 = arith.constant -4.2949673E+9 : f32
    %53 = vector.broadcast %cst_30 : f32 to vector<32x8xf32>
    %54 = arith.select %52, %49, %53 : vector<32x8xi1>, vector<32x8xf32>
    %cst_31 = arith.constant dense<0xFF800000> : vector<32xf32>
    %55 = vector.multi_reduction <maximumf>, %54, %cst_31 [1] : vector<32x8xf32> to vector<32xf32>
    %56 = vector.shape_cast %55 : vector<32xf32> to vector<32x1xf32>
    %57 = vector.broadcast %56 : vector<32x1xf32> to vector<32x8xf32>
    %58 = arith.subf %54, %57 : vector<32x8xf32>
    %59 = math.exp %58 : vector<32x8xf32>
    %cst_32 = arith.constant dense<0.000000e+00> : vector<32xf32>
    %60 = vector.multi_reduction <add>, %59, %cst_32 [1] : vector<32x8xf32> to vector<32xf32>
    %61 = vector.shape_cast %60 : vector<32xf32> to vector<32x1xf32>
    %62 = vector.broadcast %61 : vector<32x1xf32> to vector<32x8xf32>
    %63 = arith.divf %59, %62 : vector<32x8xf32>
    %c0_33 = arith.constant 0 : index
    %c0_34 = arith.constant 0 : index
    %64 = vector.load %arg14[%c0_33, %c0_34] : memref<32x8xf32, #tpu.memory_space<vmem>>, vector<32x8xf32>
    tpu.vector_store %arg14[%c0_33, %c0_34], %63 {strides = array<i32>} : memref<32x8xf32, #tpu.memory_space<vmem>>, vector<32x8xf32>,
    %65 = vector.shape_cast %63 : vector<32x8xf32> to vector<32x8x1xf32>
    %66 = vector.broadcast %65 : vector<32x8x1xf32> to vector<32x8x32xf32>
    %67 = arith.mulf %12, %66 : vector<32x8x32xf32>
    %c0_35 = arith.constant 0 : index
    %c0_36 = arith.constant 0 : index
    %c0_37 = arith.constant 0 : index
    %68 = vector.load %arg13[%c0_35, %c0_36, %c0_37] : memref<32x8x32xf32, #tpu.memory_space<vmem>>, vector<32x8x32xf32>
    tpu.vector_store %arg13[%c0_35, %c0_36, %c0_37], %67 {strides = array<i32>} : memref<32x8x32xf32, #tpu.memory_space<vmem>>, vector<32x8x32xf32>,
    return
  }
  func.func @transform_0(%arg0: i32) -> (i32, i32) {
    %c0_i32 = arith.constant 0 : i32
    %c0_i32_0 = arith.constant 0 : i32
    return %arg0, %c0_i32 : i32, i32
  }
  func.func @transform_1(%arg0: i32) -> (i32, i32, i32) {
    %c0_i32 = arith.constant 0 : i32
    %c0_i32_0 = arith.constant 0 : i32
    %c0_i32_1 = arith.constant 0 : i32
    return %arg0, %c0_i32, %c0_i32_0 : i32, i32, i32
  }
  func.func @transform_2(%arg0: i32) -> (i32, i32) {
    %c0_i32 = arith.constant 0 : i32
    %c0_i32_0 = arith.constant 0 : i32
    return %arg0, %c0_i32 : i32, i32
  }
  func.func @transform_3(%arg0: i32) -> (i32, i32) {
    %c0_i32 = arith.constant 0 : i32
    %c0_i32_0 = arith.constant 0 : i32
    %c0_i32_1 = arith.constant 0 : i32
    return %c0_i32, %c0_i32_0 : i32, i32
  }
  func.func @transform_4(%arg0: i32) -> (i32, i32) {
    %c0_i32 = arith.constant 0 : i32
    %c0_i32_0 = arith.constant 0 : i32
    %c0_i32_1 = arith.constant 0 : i32
    return %c0_i32, %c0_i32_0 : i32, i32
  }
  func.func @transform_5(%arg0: i32) -> (i32, i32) {
    %c0_i32 = arith.constant 0 : i32
    %c0_i32_0 = arith.constant 0 : i32
    %c0_i32_1 = arith.constant 0 : i32
    return %c0_i32, %c0_i32_0 : i32, i32
  }
  func.func @transform_6(%arg0: i32) -> (i32, i32) {
    %c0_i32 = arith.constant 0 : i32
    %c0_i32_0 = arith.constant 0 : i32
    %c0_i32_1 = arith.constant 0 : i32
    return %c0_i32, %c0_i32_0 : i32, i32
  }
  func.func @transform_7(%arg0: i32) -> (i32, i32) {
    %c0_i32 = arith.constant 0 : i32
    %c0_i32_0 = arith.constant 0 : i32
    %c0_i32_1 = arith.constant 0 : i32
    return %c0_i32, %c0_i32_0 : i32, i32
  }
  func.func @transform_8(%arg0: i32) -> (i32, i32) {
    %c0_i32 = arith.constant 0 : i32
    %c0_i32_0 = arith.constant 0 : i32
    %c0_i32_1 = arith.constant 0 : i32
    return %c0_i32, %c0_i32_0 : i32, i32
  }
  func.func @transform_9(%arg0: i32) -> (i32, i32) {
    %c0_i32 = arith.constant 0 : i32
    %c0_i32_0 = arith.constant 0 : i32
    %c0_i32_1 = arith.constant 0 : i32
    return %c0_i32, %c0_i32_0 : i32, i32
  }
  func.func @transform_10(%arg0: i32) -> (i32, i32) {
    %c0_i32 = arith.constant 0 : i32
    %c0_i32_0 = arith.constant 0 : i32
    %c0_i32_1 = arith.constant 0 : i32
    return %c0_i32, %c0_i32_0 : i32, i32
  }
  func.func @transform_11(%arg0: i32) -> (i32, i32) {
    %c0_i32 = arith.constant 0 : i32
    %c0_i32_0 = arith.constant 0 : i32
    %c0_i32_1 = arith.constant 0 : i32
    return %c0_i32, %c0_i32_0 : i32, i32
  }
  func.func @transform_12(%arg0: i32) -> (i32, i32, i32) {
    %c0_i32 = arith.constant 0 : i32
    %c0_i32_0 = arith.constant 0 : i32
    %c0_i32_1 = arith.constant 0 : i32
    return %arg0, %c0_i32, %c0_i32_0 : i32, i32, i32
  }
  func.func @transform_13(%arg0: i32) -> (i32, i32) {
    %c0_i32 = arith.constant 0 : i32
    %c0_i32_0 = arith.constant 0 : i32
    return %arg0, %c0_i32 : i32, i32
  }
}

</mosaic_0001>

<bundles_post_ra>
// kernel: tpu_custom_call.1
= control target key start
LH: loop header
LB: loop body
LE: loop exit
PB: predicated region body
PF: predicated region fallthrough
CT: control target
= control target key end

     0   :  { %s4322_s29 = smov 0   ;;  %s5483_s0 = inlined_call_operand.vmem [shape: f32[64,16], index: 0, kind: input, shape index: {}]   ;;  %s5484_s1 = inlined_call_operand.vmem [shape: f32[64,8,32], index: 1, kind: input, shape index: {}]   ;;  %s5485_s2 = inlined_call_operand.vmem [shape: s32[64,8], index: 2, kind: input, shape index: {}]   ;;  %s5486_s3 = inlined_call_operand.vmem [shape: f32[16,32], index: 3, kind: input, shape index: {}]   ;;  %s5487_s4 = inlined_call_operand.vmem [shape: f32[1,32], index: 4, kind: input, shape index: {}]   ;;  %s5488_s5 = inlined_call_operand.vmem [shape: f32[128,128], index: 5, kind: input, shape index: {}]   ;;  %s5489_s6 = inlined_call_operand.vmem [shape: f32[1,128], index: 6, kind: input, shape index: {}]   ;;  %s5490_s7 = inlined_call_operand.vmem [shape: f32[128,128], index: 7, kind: input, shape index: {}]   ;;  %s5491_s8 = inlined_call_operand.vmem [shape: f32[1,128], index: 8, kind: input, shape index: {}]   ;;  %s5492_s9 = inlined_call_operand.vmem [shape: f32[1,128], index: 9, kind: input, shape index: {}]   ;;  %s5493_s10 = inlined_call_operand.<no memory space> [shape: f32[1,1], index: 10, kind: input, shape index: {}]   ;;  %s5494_s11 = inlined_call_operand.<no memory space> [shape: f32[1,1], index: 11, kind: input, shape index: {}]   ;;  %s5495_s12 = inlined_call_operand.vmem [shape: f32[64,8,32], index: 12, kind: output, shape index: {0}]   ;;  %s5496_s13 = inlined_call_operand.vmem [shape: f32[64,8], index: 13, kind: output, shape index: {1}]  }
   0x1   :  { %19 = sst [smem:[#allocation2]] %s5493_s10 }
   0x2   :  { %20 = sst [smem:[#allocation3]] %s5494_s11 }
   0x3 LB: > { %s3249_s30 = sadd.s32 4294967295, %s4240_s29   ;;  %p3253_p0 = scmp.ge.s32.totalorder %s4240_s29, 1  ;;  %s4240_s29 = sphi %s4322_s29, %s26_s29  }
   0x4   : > { %p415_p1 = scmp.lt.s32.totalorder %s4240_s29, 3 }
   0x6   : > { %p416_p2 = pnand %p3253_p0, %p415_p1 }
   0x7   : > { %v508_v0 = vld [vmem:[%s5486_s3] sm:$0xff] (!%p416_p2)  ;;  %v509_v1 = vld [vmem:[%s5486_s3 + $0x8] sm:$0xff] (!%p416_p2)  ;;  %s3254_s16 = sshll.u32 (!%p416_p2), %s3249_s30, 2  ;;  %s3256_s17 = sshll.u32 (!%p416_p2), %s3249_s30, 5  ;;  %vm517_vm0 = vcmask (!%p416_p2), 130048   ;;  %v1570_v33 = vld [vmem:[%s5488_s5 + $0x10] sm:$0xff] (!%p416_p2)  ;;  %v669_v51 = vlaneseq (!%p416_p2) }
   0x8   : > { %419 = sbr.rel (%p416_p2) target bundleno = 1582 (0x62e), region = 68  ;;  %v3610_v2 = vpack.c.bf16 (!%p416_p2), %v509_v1, %v508_v0  ;;  %p475_p3 = scmp.lt.s32.totalorder (!%p416_p2), %s3254_s16, 7  ;;  %v1568_v31 = vld [vmem:[%s5488_s5] sm:$0xff] (!%p416_p2)  ;;  %v1569_v32 = vld [vmem:[%s5488_s5 + $0x8] sm:$0xff] (!%p416_p2)  ;;  %v1571_v35 = vld [vmem:[%s5488_s5 + $0x18] sm:$0xff] (!%p416_p2)  ;;  %vm1469_vm5 = vcmask (!%p416_p2), 261120  }
   0x9   : > { %p481_p4 = scmp.lt.s32.totalorder (!%p416_p2), %s3256_s17, 63  ;;  %s4242_s26 = smov (!%p416_p2), 32   ;;  %v3614_v34 = vpack.c.bf16 (!%p416_p2), %v1569_v32, %v1568_v31  ;;  %v3618_v36 = vpack.c.bf16 (!%p416_p2), %v1571_v35, %v1570_v33  ;;  %v1572_v37 = vld [vmem:[%s5488_s5 + $0x20] sm:$0xff] (!%p416_p2)  ;;  %v1573_v38 = vld [vmem:[%s5488_s5 + $0x28] sm:$0xff] (!%p416_p2)  ;;  %v1574_v40 = vld [vmem:[%s5488_s5 + $0x30] sm:$0xff] (!%p416_p2)  ;;  %v4470_v54 = vshrl.u32 (!%p416_p2), %v669_v51, 7 }
   0xa   : > { %3611 = vmatprep.subr.bf16.mxu0 (!%p416_p2), %v3610_v2  ;;  %v3622_v39 = vpack.c.bf16 (!%p416_p2), %v1573_v38, %v1572_v37  ;;  %v1575_v41 = vld [vmem:[%s5488_s5 + $0x38] sm:$0xff] (!%p416_p2)  ;;  %v1576_v43 = vld [vmem:[%s5488_s5 + $0x40] sm:$0xff] (!%p416_p2)  ;;  %v1577_v44 = vld [vmem:[%s5488_s5 + $0x48] sm:$0xff] (!%p416_p2)  ;;  %s615_s23 = sld [smem:[#allocation2]] (!%p416_p2)  ;;  %v4243_v49 = vmov (!%p416_p2), 1966171168  }
   0xb   : > { %3613 = vmatpush3.bf16.msra.mxu0 (!%p416_p2), %v3610_v2  ;;  %3615 = vmatprep.subr.bf16.mxu1 (!%p416_p2), %v3614_v34  ;;  %v3626_v42 = vpack.c.bf16 (!%p416_p2), %v1575_v41, %v1574_v40  ;;  %v3630_v45 = vpack.c.bf16 (!%p416_p2), %v1577_v44, %v1576_v43  ;;  %v1578_v46 = vld [vmem:[%s5488_s5 + $0x50] sm:$0xff] (!%p416_p2)  ;;  %v1579_v47 = vld [vmem:[%s5488_s5 + $0x58] sm:$0xff] (!%p416_p2)  ;;  %v667_v50 = vunpack.c.l.s4 (!%p416_p2), %v4243_v49  ;;  %v4467_v52 = vld [vmem:[%s5487_s4] ss:$0 sm:$0xff] (!%p416_p2)  ;;  %s4244_s28 = smov (!%p416_p2), 96   ;;  %s4245_s30 = smov (!%p416_p2), 64  }
   0xc   : > { %3617 = vmatpush3.bf16.msra.mxu1 (!%p416_p2), %v3614_v34  ;;  %v3634_v48 = vpack.c.bf16 (!%p416_p2), %v1579_v47, %v1578_v46  ;;  %vm1502_vm6 = vcmask (!%p416_p2), 523264   ;;  %vm1535_vm7 = vcmask (!%p416_p2), 785408   ;;  %vm2755_vm8 = vcmask (!%p416_p2), 1041409  }
   0xd   : > { %3619 = vmatprep.subr.bf16.mxu1 (!%p416_p2), %v3618_v36  ;;  %v668_v53 = vunpack.c.0.s8 (!%p416_p2), %v667_v50  ;;  %vm2757_vm9 = vcmask (!%p416_p2), 1042434   ;;  %vm2759_vm10 = vcmask (!%p416_p2), 1043459   ;;  %vm2761_vm11 = vcmask (!%p416_p2), 1044484  }
   0xe   : > { %vm2763_vm12 = vcmask (!%p416_p2), 1045509   ;;  %vm2765_vm13 = vcmask (!%p416_p2), 1046534   ;;  %vm2767_vm15 = vcmask (!%p416_p2), 1047559  }
   0xf   : > { %s5498_s16 = smov (!%p475_p3, %s3254_s16), 7  ;;  %s5500_s17 = smov (!%p481_p4, %s3256_s17), 63  ;;  %v4476_v59 = vsub.s32 %v668_v53, %v4470_v54 }
  0x10   : > { %s4338_s18 = sshll.u32 %s5498_s16, 3  ;;  %s3257_s22 = sshll.u32 %s5500_s17, 3  ;;  %3621 = vmatpush3.bf16.msra.mxu1 %v3618_v36  ;;  %v4472_v56 = vstv %s615_s23 }
  0x11   : > { %s478_s21 = scalar_lea.vmem %s5483_s0, %s4338_s18  ;;  %s4351_s25 = scalar_lea.vmem %s5484_s1, %s3257_s22  ;;  %3623 = vmatprep.subr.bf16.mxu1 %v3622_v39 }
  0x12   : > { %v504_v3 = vld [vmem:[%s478_s21] sm:$0xff]  ;;  %v505_v4 = vld [vmem:[%s478_s21 + $0x8] sm:$0xff]  ;;  %v506_v5 = vld [vmem:[%s478_s21 + $0x10] sm:$0xff]  ;;  %s2551_s16 = sld [smem:[#allocation3]]  ;;  %s5350_s27 = scalar_lea.vmem %s5496_s13, %s4338_s18 }
  0x13   : > { %3444 = vmatprep.mubr.msk.f32.mxu0 %vm517_vm0, %v504_v3  ;;  %v507_v6 = vld [vmem:[%s478_s21 + $0x18] sm:$0xff]  ;;  %v4355_v7 = vld [vmem:[%s4351_s25] sm:$0xff]  ;;  %v4358_v8 = vld [vmem:[%s4351_s25 + $0x8] sm:$0xff]  ;;  %s5244_s21 = scalar_lea.vmem %s5485_s2, %s4338_s18 }
  0x14   : > { %3445 = vmatmul.mubr.msk.f32.vlgmr.msra.gmra.mrb[0].mxu0 %vm517_vm0, %v505_v4  ;;  %v4361_v9 = vld [vmem:[%s4351_s25 + $0x10] sm:$0xff]  ;;  %v3690_v10 = vpack.i.bf16 %v4358_v8, %v4355_v7  ;;  %v4367_v11 = vld [vmem:[%s4351_s25 + $0x18] sm:$0xff]  ;;  %v4370_v12 = vld [vmem:[%s4351_s25 + $0x20] sm:$0xff]  ;;  %3625 = vmatpush3.bf16.msra.mxu1 %v3622_v39 }
  0x15   : > { %3447 = vmatprep.mubr.msk.f32.mxu0 %vm517_vm0, %v506_v5  ;;  %v4373_v13 = vld [vmem:[%s4351_s25 + $0x28] sm:$0xff]  ;;  %v3695_v14 = vpack.i.bf16 %v4367_v11, %v4361_v9  ;;  %v4378_v15 = vld [vmem:[%s4351_s25 + $0x30] sm:$0xff]  ;;  %v4381_v16 = vld [vmem:[%s4351_s25 + $0x38] sm:$0xff]  ;;  %3627 = vmatprep.subr.bf16.mxu1 %v3626_v42 }
  0x16   : > { %3691 = vrot.lane.b32.xlu0 %v3690_v10, %s4242_s26  ;;  %v3700_v17 = vpack.i.bf16 %v4373_v13, %v4370_v12  ;;  %v3705_v18 = vpack.i.bf16 %v4381_v16, %v4378_v15  ;;  %v4391_v19 = vld [vmem:[%s4351_s25 + $0x40] sm:$0xff]  ;;  %v4394_v20 = vld [vmem:[%s4351_s25 + $0x48] sm:$0xff]  ;;  %v4397_v21 = vld [vmem:[%s4351_s25 + $0x50] sm:$0xff] }
  0x17   : > { %3696 = vrot.lane.b32.xlu1 %v3695_v14, %s4242_s26  ;;  %v4400_v22 = vld [vmem:[%s4351_s25 + $0x58] sm:$0xff]  ;;  %v3710_v23 = vpack.i.bf16 %v4394_v20, %v4391_v19  ;;  %v4409_v25 = vld [vmem:[%s4351_s25 + $0x60] sm:$0xff]  ;;  %v4412_v26 = vld [vmem:[%s4351_s25 + $0x68] sm:$0xff]  ;;  %v4487_v14 = vsub.s32 0, %v4470_v54 }
  0x18   : > { %3448 = vmatmul.mubr.msk.f32.gmra.mrb[2].mxu0 %vm517_vm0, %v507_v6  ;;  %v3715_v24 = vpack.i.bf16 %v4400_v22, %v4397_v21  ;;  %v4415_v27 = vld [vmem:[%s4351_s25 + $0x70] sm:$0xff]  ;;  %v4418_v28 = vld [vmem:[%s4351_s25 + $0x78] sm:$0xff]  ;;  %v3720_v29 = vpack.i.bf16 %v4412_v26, %v4409_v25  ;;  %3629 = vmatpush3.bf16.msra.mxu1 %v3626_v42  ;;  %vm2798_vm0 = vcmask 64512  }
  0x19   : > { %v3725_v30 = vpack.i.bf16 %v4418_v28, %v4415_v27  ;;  %3631 = vmatprep.subr.bf16.mxu1 %v3630_v45 }
  0x1a   : > { %3701 = vrot.lane.b32.xlu0 %v3700_v17, %s4242_s26 }
  0x1b   : > { %3706 = vrot.lane.b32.xlu1 %v3705_v18, %s4242_s26 }
  0x1c   : > { %3633 = vmatpush3.bf16.msra.mxu1 %v3630_v45 }
  0x1d   : > { %3635 = vmatprep.subr.bf16.mxu1 %v3634_v48 }
  0x1e   : > { %3711 = vrot.lane.b32.xlu0 %v3710_v23, %s4242_s26 }
  0x1f   : > { %3716 = vrot.lane.b32.xlu1 %v3715_v24, %s4242_s26 }
  0x20   : > { %3637 = vmatpush3.bf16.msra.mxu1 %v3634_v48 }
  0x22   : > { %3721 = vrot.lane.b32.xlu0 %v3720_v29, %s4242_s26 }
  0x23   : > { %3726 = vrot.lane.b32.xlu1 %v3725_v30, %s4242_s26 }
  0xe7   : > { %v3446_v55 = vpop.f32.mrb[0].mxu0 }
  0xe8   : > { %v602_v57 = vadd.f32 %v3446_v55, %v4467_v52  ;;  %v596_v58 = vpop.f32.mrb[1].mxu0 }
  0xe9   : > { %v597_v60 = vadd.f32 %v4467_v52, %v596_v58 }
  0xea   : > { %vm617_vm1 = vcmp.ge.f32.partialorder %v602_v57, 0.0  ;;  %v622_v61 = vmul.f32 %v4472_v56, %v602_v57 }
  0xeb   : > { %vm616_vm2 = vcmp.ge.f32.partialorder %v597_v60, 0.0  ;;  %v621_v62 = vmul.f32 %v4472_v56, %v597_v60  ;;  %v3449_v63 = vpop.f32.mrb[2].mxu0 }
  0xec   : > { %v626_v0 = vsel %vm617_vm1, %v602_v57, %v622_v61  ;;  %v4481_v1 = vpop.f32.mrb[3].mxu0  ;;  %v612_v30 = vadd.f32 %v3449_v63, %v4467_v52 }
  0xed   : > { %v714_v2 = vcombine.high %v626_v0, %v626_v0  ;;  %v721_v3 = vrot.slane %v626_v0, %v4476_v59  ;;  %v625_v4 = vsel %vm616_vm2, %v597_v60, %v621_v62 }
  0xee   : > { %v672_v5 = vrot.slane %v625_v4, %v4476_v59  ;;  %v665_v34 = vcombine.high %v625_v4, %v625_v4  ;;  %vm619_vm3 = vcmp.ge.f32.partialorder %v612_v30, 0.0  ;;  %v624_v46 = vmul.f32 %v4472_v56, %v612_v30 }
  0xef   : > { %v729_v6 = vcombine.high %v721_v3, %v721_v3  ;;  %v737_v10 = vrot.slane %v721_v3, %v4476_v59  ;;  %v728_v17 = vrot.slane %v714_v2, %v4476_v59 }
  0xf0   : > { %v680_v18 = vcombine.high %v672_v5, %v672_v5  ;;  %v688_v24 = vrot.slane %v672_v5, %v4476_v59  ;;  %v679_v44 = vrot.slane %v665_v34, %v4476_v59  ;;  %v628_v60 = vsel %vm619_vm3, %v612_v30, %v624_v46 }
  0xf1   : > { %v751_v23 = vrot.slane %v729_v6, %v4476_v59  ;;  %v4495_v31 = vrot.slane %v737_v10, %v4487_v14  ;;  %v730_v32 = vcombine.high %v728_v17, %v728_v17  ;;  %v759_v37 = vcombine.high %v737_v10, %v737_v10 }
  0xf2   : > { %v702_v29 = vrot.slane %v680_v18, %v4476_v59  ;;  %v4504_v38 = vrot.slane %v688_v24, %v4487_v14  ;;  %v681_v57 = vcombine.high %v679_v44, %v679_v44  ;;  %v812_v6 = vcombine.high %v628_v60, %v628_v60 }
  0xf3   : > { %v761_v33 = vcombine.high %v751_v23, %v751_v23  ;;  %v4498_v35 = vrot.slane %v751_v23, %v4487_v14  ;;  %v1061_v39 = vmul.f32 %v4495_v31, %v4391_v19  ;;  %v1029_v41 = vsub.f32 %v4495_v31, %v4391_v19 }
  0xf4   : > { %v4501_v36 = vrot.slane %v702_v29, %v4487_v14  ;;  %v4515_v43 = vrot.slane %v730_v32, %v4476_v59  ;;  %v1053_v50 = vmul.f32 %v4504_v38, %v4355_v7  ;;  %v1021_v53 = vsub.f32 %v4504_v38, %v4355_v7 }
  0xf5   : > { %v1062_v40 = vmul.f32 %v4498_v35, %v4394_v20  ;;  %v1030_v42 = vsub.f32 %v4498_v35, %v4394_v20  ;;  %v4519_v45 = vrot.slane %v761_v33, %v4487_v14  ;;  %v4527_v20 = vrot.slane %v728_v17, %v4476_v59 }
  0xf6   : > { %v1054_v49 = vmul.f32 %v4501_v36, %v4358_v8  ;;  %v1022_v19 = vsub.f32 %v4501_v36, %v4358_v8  ;;  %v4536_v55 = vrot.slane %v759_v37, %v4487_v14  ;;  %v712_v8 = vcombine.high %v702_v29, %v702_v29 }
  0xf7   : > { %v3735_v47 = vpack.i.bf16 %v1062_v40, %v1061_v39  ;;  %v3730_v48 = vpack.i.bf16 %v1030_v42, %v1029_v41  ;;  %v1064_v58 = vmul.f32 %v4519_v45, %v4400_v22  ;;  %v1032_v63 = vsub.f32 %v4519_v45, %v4400_v22 }
  0xf8   : > { %v3745_v61 = vpack.i.bf16 %v1054_v49, %v1053_v50  ;;  %v3740_v62 = vpack.i.bf16 %v1022_v19, %v1021_v53  ;;  %v4545_v0 = vrot.slane %v4515_v43, %v4487_v14  ;;  %v710_v7 = vcombine.high %v688_v24, %v688_v24 }
  0xf9   : > { %3736 = vrot.lane.b32.xlu0 %v3735_v47, %s4244_s28  ;;  %3731 = vrot.lane.b32.xlu1 %v3730_v48, %s4245_s30  ;;  %v1063_v2 = vmul.f32 %v4536_v55, %v4397_v21  ;;  %v1031_v3 = vsub.f32 %v4536_v55, %v4397_v21  ;;  %v4555_v4 = vrot.slane %v4527_v20, %v4487_v14 }
  0xfa   : > { %v709_v22 = vrot.slane %v681_v57, %v4476_v59  ;;  %v4559_v5 = vrot.slane %v712_v8, %v4487_v14  ;;  %v1034_v18 = vsub.f32 %v4545_v0, %v4412_v26  ;;  %v1066_v23 = vmul.f32 %v4545_v0, %v4412_v26 }
  0xfb   : > { %v3755_v10 = vpack.i.bf16 %v1064_v58, %v1063_v2  ;;  %v3750_v17 = vpack.i.bf16 %v1032_v63, %v1031_v3  ;;  %v695_v21 = vrot.slane %v679_v44, %v4476_v59  ;;  %v4567_v24 = vrot.slane %v710_v7, %v4487_v14 }
  0xfc   : > { %v826_v29 = vrot.slane %v812_v6, %v4476_v59  ;;  %v1033_v30 = vsub.f32 %v4555_v4, %v4409_v25  ;;  %v1065_v32 = vmul.f32 %v4555_v4, %v4409_v25  ;;  %v607_v26 = vadd.f32 %v4467_v52, %v4481_v1 }
  0xfd   : > { %3746 = vrot.lane.b32.xlu1 %v3745_v61, %s4244_s28  ;;  %3741 = vrot.lane.b32.xlu0 %v3740_v62, %s4245_s30  ;;  %v1056_v33 = vmul.f32 %v4559_v5, %v4367_v11  ;;  %v4581_v34 = vrot.slane %v709_v22, %v4487_v14  ;;  %v1024_v42 = vsub.f32 %v4559_v5, %v4367_v11 }
  0xfe   : > { %v828_v37 = vcombine.high %v826_v29, %v826_v29  ;;  %v4584_v39 = vrot.slane %v826_v29, %v4476_v59  ;;  %v3760_v40 = vpack.i.bf16 %v1034_v18, %v1033_v30  ;;  %v3765_v41 = vpack.i.bf16 %v1066_v23, %v1065_v32  ;;  %v4647_v23 = vld [vmem:[%s4351_s25 + $0x90] sm:$0xff]  ;;  %v645_v30 = vld [vmem:[%s4351_s25 + $0x80] sm:$0xff]  ;;  %v646_v32 = vld [vmem:[%s4351_s25 + $0x88] sm:$0xff] }
  0xff   : > { %v762_v25 = vcombine.high %v4515_v43, %v4515_v43  ;;  %v1055_v52 = vmul.f32 %v4567_v24, %v4361_v9  ;;  %v4593_v1 = vrot.slane %v695_v21, %v4487_v14  ;;  %v760_v46 = vcombine.high %v4527_v20, %v4527_v20 }
 0x100   : > { %v4596_v44 = vrot.slane %v828_v37, %v4476_v59  ;;  %v1023_v11 = vsub.f32 %v4567_v24, %v4361_v9  ;;  %v1058_v47 = vmul.f32 %v4581_v34, %v4373_v13  ;;  %v1026_v48 = vsub.f32 %v4581_v34, %v4373_v13 }
 0x101   : > { %3756 = vrot.lane.b32.xlu1 %v3755_v10, %s4244_s28  ;;  %3751 = vrot.lane.b32.xlu0 %v3750_v17, %s4245_s30  ;;  %v3775_v43 = vpack.i.bf16 %v1056_v33, %v1055_v52  ;;  %v623_v19 = vmul.f32 %v4472_v56, %v607_v26  ;;  %v4610_v50 = vrot.slane %v762_v25, %v4487_v14  ;;  %vm618_vm4 = vcmp.ge.f32.partialorder %v607_v26, 0.0  ;;  %v4666_v25 = vld [vmem:[%s4351_s25 + $0xb0] sm:$0xff]  ;;  %v4669_v52 = vld [vmem:[%s4351_s25 + $0xb8] sm:$0xff] }
 0x102   : > { %v3770_v49 = vpack.i.bf16 %v1024_v42, %v1023_v11  ;;  %v713_v20 = vcombine.high %v709_v22, %v709_v22  ;;  %v1057_v53 = vmul.f32 %v4593_v1, %v4370_v12  ;;  %v1025_v9 = vsub.f32 %v4593_v1, %v4370_v12  ;;  %v4679_v11 = vld [vmem:[%s4351_s25 + $0xa0] sm:$0xff] }
 0x103   : > { %v819_v57 = vrot.slane %v628_v60, %v4476_v59  ;;  %v711_v8 = vcombine.high %v695_v21, %v695_v21  ;;  %v4620_v13 = vrot.slane %v760_v46, %v4487_v14  ;;  %v627_v61 = vsel %vm618_vm4, %v607_v26, %v623_v19  ;;  %v654_v19 = vld [vmem:[%s4351_s25 + $0xc8] sm:$0xff] }
 0x104   : > { %v3785_v56 = vpack.i.bf16 %v1058_v47, %v1057_v53  ;;  %v3780_v58 = vpack.i.bf16 %v1026_v48, %v1025_v9  ;;  %v1036_v62 = vsub.f32 %v4610_v50, %v4418_v28  ;;  %v1068_v12 = vmul.f32 %v4610_v50, %v4418_v28  ;;  %v1580_v53 = vld [vmem:[%s5488_s5 + $0x60] sm:$0xff]  ;;  %v1581_v9 = vld [vmem:[%s5488_s5 + $0x68] sm:$0xff] }
 0x105   : > { %3761 = vrot.lane.b32.xlu1 %v3760_v40, %s4245_s30  ;;  %3766 = vrot.lane.b32.xlu0 %v3765_v41, %s4244_s28  ;;  %v4627_v60 = vrot.slane %v713_v20, %v4487_v14  ;;  %v827_v63 = vcombine.high %v819_v57, %v819_v57  ;;  %v1035_v7 = vsub.f32 %v4620_v13, %v4415_v27 }
 0x106   : > { %v1067_v2 = vmul.f32 %v4620_v13, %v4415_v27  ;;  %v4636_v3 = vrot.slane %v711_v8, %v4487_v14  ;;  %v770_v28 = vrot.slane %v627_v61, %v4476_v59  ;;  %v4644_v18 = vrot.slane %v819_v57, %v4476_v59  ;;  %v4650_v27 = vld [vmem:[%s4351_s25 + $0x98] sm:$0xff] }
 0x107   : > { %v3790_v22 = vpack.i.bf16 %v1036_v62, %v1035_v7  ;;  %v1060_v10 = vmul.f32 %v4627_v60, %v4381_v16  ;;  %v1028_v17 = vsub.f32 %v4627_v60, %v4381_v16  ;;  %v4653_v21 = vrot.slane %v827_v63, %v4476_v59 }
 0x108   : > { %v3795_v6 = vpack.i.bf16 %v1068_v12, %v1067_v2  ;;  %v1059_v29 = vmul.f32 %v4636_v3, %v4378_v15  ;;  %v1027_v16 = vsub.f32 %v4636_v3, %v4378_v15  ;;  %v778_v26 = vcombine.high %v770_v28, %v770_v28 }
 0x109   : > { %3776 = vrot.lane.b32.xlu1 %v3775_v43, %s4244_s28  ;;  %3771 = vrot.lane.b32.xlu0 %v3770_v49, %s4245_s30  ;;  %v763_v33 = vcombine.high %v627_v61, %v627_v61  ;;  %v3815_v41 = vpack.i.bf16 %v4650_v27, %v4647_v23  ;;  %v3805_v42 = vpack.i.bf16 %v646_v32, %v645_v30  ;;  %v4682_v43 = vld [vmem:[%s4351_s25 + $0xa8] sm:$0xff]  ;;  %v653_v49 = vld [vmem:[%s4351_s25 + $0xc0] sm:$0xff] }
 0x10a   : > { %v3810_v37 = vpack.i.bf16 %v1060_v10, %v1059_v29  ;;  %v3800_v40 = vpack.i.bf16 %v1028_v17, %v1027_v16  ;;  %v4673_v15 = vrot.slane %v4644_v18, %v4487_v14  ;;  %v786_v46 = vrot.slane %v770_v28, %v4476_v59 }
 0x10b   : > { %v4686_v47 = vrot.slane %v4653_v21, %v4487_v14  ;;  %v800_v48 = vrot.slane %v778_v26, %v4476_v59  ;;  %v777_v20 = vrot.slane %v763_v33, %v4476_v59  ;;  %v3825_v57 = vpack.i.bf16 %v4669_v52, %v4666_v25 }
 0x10c   : > { %v3820_v8 = vpack.i.bf16 %v4682_v43, %v4679_v11  ;;  %v4709_v61 = vrot.slane %v786_v46, %v4487_v14  ;;  %v1045_v62 = vsub.f32 %v4673_v15, %v653_v49  ;;  %v808_v63 = vcombine.high %v786_v46, %v786_v46 }
 0x10d   : > { %3786 = vrot.lane.b32.xlu0 %v3785_v56, %s4244_s28  ;;  %3781 = vrot.lane.b32.xlu1 %v3780_v58, %s4245_s30  ;;  %v1582_v56 = vld [vmem:[%s5488_s5 + $0x70] sm:$0xff]  ;;  %v1583_v58 = vld [vmem:[%s5488_s5 + $0x78] sm:$0xff]  ;;  %v1046_v12 = vsub.f32 %v4686_v47, %v654_v19  ;;  %v4716_v7 = vrot.slane %v800_v48, %v4487_v14  ;;  %v3638_v2 = vpack.c.bf16 %v1581_v9, %v1580_v53 }
 0x10e   : > { %v779_v28 = vcombine.high %v777_v20, %v777_v20  ;;  %v3830_v17 = vpack.i.bf16 %v654_v19, %v653_v49  ;;  %v1037_v29 = vsub.f32 %v4709_v61, %v645_v30  ;;  %v1077_v26 = vmul.f32 %v4673_v15, %v653_v49 }
 0x10f   : > { %3639 = vmatprep.subr.bf16.mxu1 %v3638_v2  ;;  %v3835_v10 = vpack.i.bf16 %v1046_v12, %v1045_v62  ;;  %v1038_v16 = vsub.f32 %v4716_v7, %v646_v32  ;;  %v1078_v33 = vmul.f32 %v4686_v47, %v654_v19  ;;  %v1069_v19 = vmul.f32 %v4709_v61, %v645_v30 }
 0x110   : > { %3641 = vmatpush3.bf16.msra.mxu1 %v3638_v2 }
 0x111   : > { %3791 = vrot.lane.b32.xlu0 %v3790_v22, %s4245_s30  ;;  %3796 = vrot.lane.b32.xlu1 %v3795_v6, %s4244_s28  ;;  %v810_v22 = vcombine.high %v800_v48, %v800_v48  ;;  %v3642_v6 = vpack.c.bf16 %v1583_v58, %v1582_v56  ;;  %v3845_v46 = vpack.i.bf16 %v1038_v16, %v1037_v29  ;;  %v656_v29 = vld [vmem:[%s4351_s25 + $0xd8] sm:$0xff] }
 0x112   : > { %v3840_v48 = vpack.i.bf16 %v1078_v33, %v1077_v26 }
 0x113   : > { %3643 = vmatprep.subr.bf16.mxu1 %v3642_v6 }
 0x114   : > { %3645 = vmatpush3.bf16.msra.mxu1 %v3642_v6 }
 0x115   : > { %3811 = vrot.lane.b32.xlu1 %v3810_v37, %s4244_s28  ;;  %3801 = vrot.lane.b32.xlu0 %v3800_v40, %s4245_s30  ;;  %v4725_v37 = vrot.slane %v808_v63, %v4487_v14  ;;  %v793_v40 = vrot.slane %v777_v20, %v4476_v59 }
 0x117   : > { %v1071_v49 = vmul.f32 %v4725_v37, %v4647_v23  ;;  %v4741_v53 = vrot.slane %v793_v40, %v4487_v14  ;;  %v1039_v30 = vsub.f32 %v4725_v37, %v4647_v23  ;;  %v857_v23 = vcombine.high %v4644_v18, %v4644_v18 }
 0x119   : > { %3816 = vrot.lane.b32.xlu1 %v3815_v41, %s4242_s26  ;;  %3806 = vrot.lane.b32.xlu0 %v3805_v42, %s4242_s26  ;;  %v807_v41 = vrot.slane %v779_v28, %v4476_v59  ;;  %v4730_v42 = vrot.slane %v810_v22, %v4487_v14  ;;  %v1070_v59 = vmul.f32 %v4716_v7, %v646_v32 }
 0x11a   : > { %v1041_v62 = vsub.f32 %v4741_v53, %v4679_v11  ;;  %v1073_v63 = vmul.f32 %v4741_v53, %v4679_v11  ;;  %v4777_v11 = vrot.slane %v857_v23, %v4487_v14 }
 0x11b   : > { %v1072_v20 = vmul.f32 %v4730_v42, %v4650_v27  ;;  %v4744_v9 = vrot.slane %v807_v41, %v4487_v14  ;;  %v811_v56 = vcombine.high %v807_v41, %v807_v41  ;;  %v3850_v58 = vpack.i.bf16 %v1070_v59, %v1069_v19  ;;  %v657_v59 = vld [vmem:[%s4351_s25 + $0xe0] sm:$0xff] }
 0x11d   : > { %3826 = vrot.lane.b32.xlu1 %v3825_v57, %s4242_s26  ;;  %3821 = vrot.lane.b32.xlu0 %v3820_v8, %s4242_s26  ;;  %v809_v57 = vcombine.high %v793_v40, %v793_v40  ;;  %v1040_v8 = vsub.f32 %v4730_v42, %v4650_v27  ;;  %v3860_v32 = vpack.i.bf16 %v1072_v20, %v1071_v49 }
 0x11e   : > { %v1042_v12 = vsub.f32 %v4744_v9, %v4682_v43  ;;  %v859_v27 = vcombine.high %v4653_v21, %v4653_v21  ;;  %v1074_v2 = vmul.f32 %v4744_v9, %v4682_v43  ;;  %v4800_v49 = vrot.slane %v4596_v44, %v4487_v14 }
 0x11f   : > { %v3855_v22 = vpack.i.bf16 %v1040_v8, %v1039_v30  ;;  %v4767_v6 = vrot.slane %v809_v57, %v4487_v14  ;;  %v658_v57 = vld [vmem:[%s4351_s25 + $0xe8] sm:$0xff]  ;;  %v858_v30 = vcombine.high %v4584_v39, %v4584_v39 }
 0x120   : > { %v3865_v28 = vpack.i.bf16 %v1042_v12, %v1041_v62  ;;  %v3875_v21 = vpack.i.bf16 %v1074_v2, %v1073_v63  ;;  %v4780_v43 = vrot.slane %v859_v27, %v4487_v14  ;;  %v860_v62 = vcombine.high %v4596_v44, %v4596_v44 }
 0x121   : > { %3836 = vrot.lane.b32.xlu1 %v3835_v10, %s4245_s30  ;;  %3831 = vrot.lane.b32.xlu0 %v3830_v17, %s4242_s26  ;;  %v4770_v10 = vrot.slane %v811_v56, %v4487_v14  ;;  %v655_v17 = vld [vmem:[%s4351_s25 + $0xd0] sm:$0xff]  ;;  %v1075_v16 = vmul.f32 %v4767_v6, %v4666_v25  ;;  %v1043_v33 = vsub.f32 %v4767_v6, %v4666_v25 }
 0x122   : > { %v3870_v18 = vpack.i.bf16 %v656_v29, %v655_v17  ;;  %v1079_v41 = vmul.f32 %v4777_v11, %v655_v17  ;;  %v1048_v20 = vsub.f32 %v4780_v43, %v656_v29  ;;  %v3900_v12 = vpack.i.bf16 %v658_v57, %v657_v59 }
 0x123   : > { %v1076_v26 = vmul.f32 %v4770_v10, %v4669_v52  ;;  %v1044_v40 = vsub.f32 %v4770_v10, %v4669_v52  ;;  %v1047_v52 = vsub.f32 %v4777_v11, %v655_v17  ;;  %v1082_v27 = vmul.f32 %v4800_v49, %v658_v57  ;;  %v2008_v17 = vld [vmem:[%s5490_s7] sm:$0xff] }
 0x124   : > { %v4822_v2 = vrot.slane %v860_v62, %v4487_v14 }
 0x125   : > { %3846 = vrot.lane.b32.xlu1 %v3845_v46, %s4245_s30  ;;  %3841 = vrot.lane.b32.xlu0 %v3840_v48, %s4244_s28  ;;  %v1080_v46 = vmul.f32 %v4780_v43, %v656_v29  ;;  %v4796_v48 = vrot.slane %v4584_v39, %v4487_v14  ;;  %v3890_v25 = vpack.i.bf16 %v1076_v26, %v1075_v16  ;;  %v2009_v29 = vld [vmem:[%s5490_s7 + $0x8] sm:$0xff] }
 0x126   : > { %v3880_v19 = vpack.i.bf16 %v1044_v40, %v1043_v33  ;;  %v4819_v39 = vrot.slane %v858_v30, %v4487_v14 }
 0x127   : > { %v1049_v8 = vsub.f32 %v4796_v48, %v657_v59  ;;  %v3895_v56 = vpack.i.bf16 %v1080_v46, %v1079_v41  ;;  %v1081_v23 = vmul.f32 %v4796_v48, %v657_v59 }
 0x129   : > { %3861 = vrot.lane.b32.xlu1 %v3860_v32, %s4244_s28  ;;  %3851 = vrot.lane.b32.xlu0 %v3850_v58, %s4244_s28  ;;  %v3885_v32 = vpack.i.bf16 %v1048_v20, %v1047_v52  ;;  %v1050_v58 = vsub.f32 %v4800_v49, %v658_v57 }
 0x12b   : > { %v3905_v63 = vpack.i.bf16 %v1050_v58, %v1049_v8 }
 0x12d   : > { %3866 = vrot.lane.b32.xlu1 %v3865_v28, %s4245_s30  ;;  %3856 = vrot.lane.b32.xlu0 %v3855_v22, %s4245_s30  ;;  %v659_v28 = vld [vmem:[%s4351_s25 + $0xf0] sm:$0xff]  ;;  %v660_v22 = vld [vmem:[%s4351_s25 + $0xf8] sm:$0xff] }
 0x12e   : > { %v3915_v44 = vpack.i.bf16 %v660_v22, %v659_v28  ;;  %v1083_v16 = vmul.f32 %v4819_v39, %v659_v28  ;;  %v1084_v26 = vmul.f32 %v4822_v2, %v660_v22  ;;  %v1051_v33 = vsub.f32 %v4819_v39, %v659_v28 }
 0x12f   : > { %v1052_v40 = vsub.f32 %v4822_v2, %v660_v22 }
 0x130   : > { %v3925_v41 = vpack.i.bf16 %v1084_v26, %v1083_v16 }
 0x131   : > { %3871 = vrot.lane.b32.xlu1 %v3870_v18, %s4242_s26  ;;  %3876 = vrot.lane.b32.xlu0 %v3875_v21, %s4244_s28  ;;  %v3910_v18 = vpack.i.bf16 %v1082_v27, %v1081_v23  ;;  %v3646_v21 = vpack.c.bf16 %v2009_v29, %v2008_v17  ;;  %v3920_v46 = vpack.i.bf16 %v1052_v40, %v1051_v33 }
 0x133   : > { %3647 = vmatprep.subr.bf16.mxu0 %v3646_v21 }
 0x134   : > { %3649 = vmatpush3.bf16.msra.mxu0 %v3646_v21 }
 0x135   : > { %3891 = vrot.lane.b32.xlu1 %v3890_v25, %s4244_s28  ;;  %3881 = vrot.lane.b32.xlu0 %v3880_v19, %s4245_s30  ;;  %v3692_v25 = vpop.permute.xlu0 %3691  ;;  %v3697_v19 = vpop.permute.xlu1 %3696 }
 0x136   : > { %v3694_v58 = vunpack.i.h.bf16 %v3692_v25  ;;  %v3693_v62 = vunpack.i.l.bf16 %v3692_v25 }
 0x138   : > { %v1471_v17 = vsel %vm1469_vm5, %v4501_v36, %v3694_v58  ;;  %v3699_v36 = vunpack.i.h.bf16 %v3697_v19 }
 0x139   : > { %3896 = vrot.lane.b32.xlu1 %v3895_v56, %s4244_s28  ;;  %3886 = vrot.lane.b32.xlu0 %v3885_v32, %s4245_s30  ;;  %v3702_v52 = vpop.permute.xlu0 %3701  ;;  %v4842_v20 = vpop.permute.xlu1 %3706 }
 0x13d   : > { %3906 = vrot.lane.b32.xlu1 %v3905_v63, %s4245_s30  ;;  %3901 = vrot.lane.b32.xlu0 %v3900_v12, %s4242_s26  ;;  %v4844_v59 = vpop.permute.xlu0 %3711  ;;  %v4846_v57 = vpop.permute.xlu1 %3716 }
 0x141   : > { %3916 = vrot.lane.b32.xlu1 %v3915_v44, %s4242_s26  ;;  %3911 = vrot.lane.b32.xlu0 %v3910_v18, %s4244_s28  ;;  %v4848_v30 = vpop.permute.xlu0 %3721  ;;  %v4850_v8 = vpop.permute.xlu1 %3726  ;;  %v1470_v44 = vsel %vm1469_vm5, %v4504_v38, %v3693_v62  ;;  %s5382_s26 = scalar_lea.vmem %s5495_s12, %s3257_s22 }
 0x145   : > { %3926 = vrot.lane.b32.xlu1 %v3925_v41, %s4244_s28  ;;  %3921 = vrot.lane.b32.xlu0 %v3920_v46, %s4245_s30  ;;  %v3698_v41 = vunpack.i.l.bf16 %v3697_v19 }
 0x16b   : > { %v4852_v56 = vpop.permute.xlu0 %3736  ;;  %v4854_v32 = vpop.permute.xlu1 %3731 }
 0x16f   : > { %v3747_v12 = vpop.permute.xlu1 %3746  ;;  %v3742_v23 = vpop.permute.xlu0 %3741 }
 0x170   : > { %v3749_v27 = vunpack.i.h.bf16 %v3747_v12  ;;  %v3748_v63 = vunpack.i.l.bf16 %v3747_v12  ;;  %v3744_v28 = vunpack.i.h.bf16 %v3742_v23  ;;  %v3743_v22 = vunpack.i.l.bf16 %v3742_v23 }
 0x172   : > { %v1503_v29 = vsel %vm1502_vm6, %v1470_v44, %v3743_v22  ;;  %v1504_v18 = vsel %vm1502_vm6, %v1471_v17, %v3744_v28  ;;  %v3704_v28 = vunpack.i.h.bf16 %v3702_v52  ;;  %v3703_v22 = vunpack.i.l.bf16 %v3702_v52 }
 0x173   : > { %v4862_v21 = vpop.permute.xlu1 %3756  ;;  %v4864_v16 = vpop.permute.xlu0 %3751  ;;  %v1536_v26 = vsel %vm1535_vm7, %v1503_v29, %v3748_v63  ;;  %v1537_v33 = vsel %vm1535_vm7, %v1504_v18, %v3749_v27  ;;  %v1472_v63 = vsel %vm1469_vm5, %v4567_v24, %v3698_v41  ;;  %v1473_v27 = vsel %vm1469_vm5, %v4559_v5, %v3699_v36 }
 0x174   : > { %3482 = vmatprep.mubr.f32.mxu1 %v1536_v26  ;;  %v1474_v24 = vsel %vm1469_vm5, %v4593_v1, %v3703_v22  ;;  %v1475_v5 = vsel %vm1469_vm5, %v4581_v34, %v3704_v28  ;;  %v3709_v1 = vunpack.i.h.bf16 %v4842_v20  ;;  %v3713_v22 = vunpack.i.l.bf16 %v4844_v59 }
 0x175   : > { %3483 = vmatmul.mubr.f32.vlgmr.msra.gmra.mrb[0].mxu1 %v1537_v33  ;;  %v3733_v34 = vunpack.i.l.bf16 %v4854_v32  ;;  %v3714_v28 = vunpack.i.h.bf16 %v4844_v59 }
 0x176   : > { %v1478_v59 = vsel %vm1469_vm5, %v4495_v31, %v3713_v22  ;;  %v3723_v31 = vunpack.i.l.bf16 %v4848_v30  ;;  %v3754_v22 = vunpack.i.h.bf16 %v4864_v16 }
 0x177   : > { %v4868_v38 = vpop.permute.xlu1 %3761  ;;  %v4870_v40 = vpop.permute.xlu0 %3766 }
 0x17b   : > { %v3777_v46 = vpop.permute.xlu1 %3776  ;;  %v3772_v25 = vpop.permute.xlu0 %3771 }
 0x17c   : > { %v3779_v58 = vunpack.i.h.bf16 %v3777_v46  ;;  %v3778_v62 = vunpack.i.l.bf16 %v3777_v46  ;;  %v3774_v12 = vunpack.i.h.bf16 %v3772_v25  ;;  %v3773_v23 = vunpack.i.l.bf16 %v3772_v25 }
 0x17e   : > { %v1505_v44 = vsel %vm1502_vm6, %v1472_v63, %v3773_v23  ;;  %v1506_v17 = vsel %vm1502_vm6, %v1473_v27, %v3774_v12  ;;  %v3718_v27 = vunpack.i.l.bf16 %v4846_v57 }
 0x17f   : > { %v3787_v29 = vpop.permute.xlu0 %3786  ;;  %v3782_v19 = vpop.permute.xlu1 %3781  ;;  %v1538_v18 = vsel %vm1535_vm7, %v1505_v44, %v3778_v62  ;;  %v1539_v26 = vsel %vm1535_vm7, %v1506_v17, %v3779_v58  ;;  %v3708_v62 = vunpack.i.l.bf16 %v4842_v20  ;;  %v3738_v20 = vunpack.i.l.bf16 %v4852_v56 }
 0x180   : > { %v3789_v33 = vunpack.i.h.bf16 %v3787_v29  ;;  %v3788_v46 = vunpack.i.l.bf16 %v3787_v29  ;;  %v3784_v25 = vunpack.i.h.bf16 %v3782_v19  ;;  %v3783_v52 = vunpack.i.l.bf16 %v3782_v19  ;;  %3485 = vmatprep.mubr.f32.mxu1 %v1538_v18 }
 0x181   : > { %3486 = vmatmul.mubr.f32.gmra.mrb[2].mxu1 %v1539_v26  ;;  %v1476_v29 = vsel %vm1469_vm5, %v4636_v3, %v3708_v62 }
 0x182   : > { %v1507_v36 = vsel %vm1502_vm6, %v1474_v24, %v3783_v52  ;;  %v1508_v41 = vsel %vm1502_vm6, %v1475_v5, %v3784_v25  ;;  %v1477_v25 = vsel %vm1469_vm5, %v4627_v60, %v3709_v1  ;;  %v3753_v52 = vunpack.i.l.bf16 %v4864_v16 }
 0x183   : > { %v4887_v12 = vpop.permute.xlu0 %3791  ;;  %v4889_v58 = vpop.permute.xlu1 %3796  ;;  %v1540_v23 = vsel %vm1535_vm7, %v1507_v36, %v3788_v46  ;;  %v1541_v63 = vsel %vm1535_vm7, %v1508_v41, %v3789_v33  ;;  %v3734_v46 = vunpack.i.h.bf16 %v4854_v32  ;;  %v1511_v5 = vsel %vm1502_vm6, %v1478_v59, %v3733_v34 }
 0x184   : > { %3488 = vmatprep.mubr.f32.mxu1 %v1540_v23  ;;  %v3719_v36 = vunpack.i.h.bf16 %v4846_v57  ;;  %v3739_v23 = vunpack.i.h.bf16 %v4852_v56  ;;  %v1480_v1 = vsel %vm1469_vm5, %v4536_v55, %v3718_v27  ;;  %v3758_v57 = vunpack.i.l.bf16 %v4862_v21 }
 0x185   : > { %3489 = vmatmul.mubr.f32.gmra.mrb[4].mxu1 %v1541_v63  ;;  %v1479_v63 = vsel %vm1469_vm5, %v4498_v35, %v3714_v28  ;;  %v1544_v34 = vsel %vm1535_vm7, %v1511_v5, %v3738_v20  ;;  %v1513_v56 = vsel %vm1502_vm6, %v1480_v1, %v3753_v52  ;;  %v3728_v35 = vunpack.i.l.bf16 %v4850_v8 }
 0x186   : > { %v3759_v16 = vunpack.i.h.bf16 %v4862_v21  ;;  %v3798_v5 = vunpack.i.l.bf16 %v4889_v58 }
 0x187   : > { %v3812_v44 = vpop.permute.xlu1 %3811  ;;  %v3802_v17 = vpop.permute.xlu0 %3801 }
 0x188   : > { %v3814_v19 = vunpack.i.h.bf16 %v3812_v44  ;;  %v3813_v18 = vunpack.i.l.bf16 %v3812_v44  ;;  %v3804_v26 = vunpack.i.h.bf16 %v3802_v17  ;;  %v3803_v33 = vunpack.i.l.bf16 %v3802_v17 }
 0x189   : > { %v1512_v44 = vsel %vm1502_vm6, %v1479_v63, %v3734_v46  ;;  %v3763_v17 = vunpack.i.l.bf16 %v4868_v38  ;;  %v3793_v46 = vunpack.i.l.bf16 %v4887_v12 }
 0x18a   : > { %v1509_v24 = vsel %vm1502_vm6, %v1476_v29, %v3803_v33  ;;  %v1510_v3 = vsel %vm1502_vm6, %v1477_v25, %v3804_v26  ;;  %v3724_v29 = vunpack.i.h.bf16 %v4848_v30  ;;  %v1545_v27 = vsel %vm1535_vm7, %v1512_v44, %v3739_v23 }
 0x18b   : > { %v4911_v41 = vpop.permute.xlu1 %3816  ;;  %v4913_v62 = vpop.permute.xlu0 %3806  ;;  %v1542_v32 = vsel %vm1535_vm7, %v1509_v24, %v3813_v18  ;;  %v1543_v60 = vsel %vm1535_vm7, %v1510_v3, %v3814_v19  ;;  %v1481_v19 = vsel %vm1469_vm5, %v4519_v45, %v3719_v36  ;;  %v1482_v18 = vsel %vm1469_vm5, %v4555_v4, %v3723_v31 }
 0x18c   : > { %3491 = vmatprep.mubr.f32.mxu1 %v1542_v32  ;;  %v3764_v26 = vunpack.i.h.bf16 %v4868_v38  ;;  %v3768_v30 = vunpack.i.l.bf16 %v4870_v40  ;;  %v1546_v33 = vsel %vm1535_vm7, %v1513_v56, %v3758_v57  ;;  %v1514_v20 = vsel %vm1502_vm6, %v1481_v19, %v3754_v22 }
 0x18d   : > { %3492 = vmatmul.mubr.f32.gmra.mrb[6].mxu1 %v1543_v60  ;;  %v1515_v21 = vsel %vm1502_vm6, %v1482_v18, %v3763_v17  ;;  %v3729_v25 = vunpack.i.h.bf16 %v4850_v8  ;;  %v3769_v4 = vunpack.i.h.bf16 %v4870_v40  ;;  %v1547_v38 = vsel %vm1535_vm7, %v1514_v20, %v3759_v16 }
 0x18e   : > { %3494 = vmatprep.mubr.f32.mxu1 %v1544_v34  ;;  %v1483_v52 = vsel %vm1469_vm5, %v4545_v0, %v3724_v29  ;;  %v1484_v24 = vsel %vm1469_vm5, %v4620_v13, %v3728_v35  ;;  %v3794_v3 = vunpack.i.h.bf16 %v4887_v12  ;;  %v1548_v8 = vsel %vm1535_vm7, %v1515_v21, %v3768_v30 }
 0x18f   : > { %v4931_v28 = vpop.permute.xlu1 %3826  ;;  %v4933_v55 = vpop.permute.xlu0 %3821  ;;  %v1516_v36 = vsel %vm1502_vm6, %v1483_v52, %v3764_v26  ;;  %v1517_v40 = vsel %vm1502_vm6, %v1484_v24, %v3793_v46  ;;  %v3799_v0 = vunpack.i.h.bf16 %v4889_v58  ;;  %v3808_v31 = vunpack.i.l.bf16 %v4913_v62 }
 0x190   : > { %v1549_v13 = vsel %vm1535_vm7, %v1516_v36, %v3769_v4  ;;  %v1485_v12 = vsel %vm1469_vm5, %v4610_v50, %v3729_v25  ;;  %v1550_v63 = vsel %vm1535_vm7, %v1517_v40, %v3798_v5  ;;  %v3809_v57 = vunpack.i.h.bf16 %v4913_v62 }
 0x191   : > { %3495 = vmatmul.mubr.f32.gmra.mrb[8].mxu1 %v1545_v27  ;;  %v1518_v1 = vsel %vm1502_vm6, %v1485_v12, %v3794_v3  ;;  %v3819_v22 = vunpack.i.h.bf16 %v4911_v41  ;;  %v3818_v58 = vunpack.i.l.bf16 %v4911_v41  ;;  %v1486_v35 = vsel %vm1469_vm5, %v4709_v61, %v3808_v31 }
 0x192   : > { %3497 = vmatprep.mubr.f32.mxu1 %v1546_v33  ;;  %v1551_v50 = vsel %vm1535_vm7, %v1518_v1, %v3799_v0  ;;  %v1487_v27 = vsel %vm1469_vm5, %v4716_v7, %v3809_v57  ;;  %v3823_v61 = vunpack.i.l.bf16 %v4933_v55  ;;  %v3824_v21 = vunpack.i.h.bf16 %v4933_v55 }
 0x193   : > { %v4948_v45 = vpop.permute.xlu1 %3836  ;;  %v4950_v59 = vpop.permute.xlu0 %3831  ;;  %v1488_v26 = vsel %vm1469_vm5, %v4725_v37, %v3818_v58  ;;  %v1489_v30 = vsel %vm1469_vm5, %v4730_v42, %v3819_v22  ;;  %v3828_v24 = vunpack.i.l.bf16 %v4931_v28 }
 0x194   : > { %v1490_v55 = vsel %vm1469_vm5, %v4741_v53, %v3823_v61  ;;  %v3833_v0 = vunpack.i.l.bf16 %v4950_v59  ;;  %v3834_v1 = vunpack.i.h.bf16 %v4950_v59 }
 0x195   : > { %3498 = vmatmul.mubr.f32.gmra.mrb[10].mxu1 %v1547_v38  ;;  %v1492_v22 = vsel %vm1469_vm5, %v4767_v6, %v3828_v24 }
 0x196   : > { %3500 = vmatprep.mubr.f32.mxu1 %v1548_v8  ;;  %v1494_v59 = vsel %vm1469_vm5, %v4673_v15, %v3833_v0 }
 0x197   : > { %v3847_v32 = vpop.permute.xlu1 %3846  ;;  %v4963_v60 = vpop.permute.xlu0 %3841 }
 0x198   : > { %v3848_v23 = vunpack.i.l.bf16 %v3847_v32  ;;  %v3849_v34 = vunpack.i.h.bf16 %v3847_v32  ;;  %v3829_v32 = vunpack.i.h.bf16 %v4931_v28 }
 0x199   : > { %3501 = vmatmul.mubr.f32.gmra.mrb[12].mxu1 %v1549_v13  ;;  %v1491_v13 = vsel %vm1469_vm5, %v4744_v9, %v3824_v21 }
 0x19a   : > { %3503 = vmatprep.mubr.f32.mxu1 %v1550_v63  ;;  %v1519_v16 = vsel %vm1502_vm6, %v1486_v35, %v3848_v23  ;;  %v1520_v18 = vsel %vm1502_vm6, %v1487_v27, %v3849_v34  ;;  %v3838_v63 = vunpack.i.l.bf16 %v4948_v45 }
 0x19b   : > { %v3862_v44 = vpop.permute.xlu1 %3861  ;;  %v3852_v17 = vpop.permute.xlu0 %3851 }
 0x19c   : > { %v3854_v56 = vunpack.i.h.bf16 %v3852_v17  ;;  %v3853_v29 = vunpack.i.l.bf16 %v3852_v17  ;;  %v3864_v7 = vunpack.i.h.bf16 %v3862_v44  ;;  %v3863_v25 = vunpack.i.l.bf16 %v3862_v44 }
 0x19d   : > { %3504 = vmatmul.mubr.f32.gmra.mrb[14].mxu1 %v1551_v50  ;;  %v3843_v17 = vunpack.i.l.bf16 %v4963_v60  ;;  %v3839_v50 = vunpack.i.h.bf16 %v4948_v45  ;;  %v1527_v15 = vsel %vm1502_vm6, %v1494_v59, %v3838_v63  ;;  %v2014_v59 = vld [vmem:[%s5490_s7 + $0x30] sm:$0xff] }
 0x19e   : > { %v1552_v62 = vsel %vm1535_vm7, %v1519_v16, %v3853_v29  ;;  %v1553_v46 = vsel %vm1535_vm7, %v1520_v18, %v3854_v56  ;;  %v1493_v29 = vsel %vm1469_vm5, %v4770_v10, %v3829_v32  ;;  %v3844_v16 = vunpack.i.h.bf16 %v4963_v60 }
 0x19f   : > { %v3867_v19 = vpop.permute.xlu1 %3866  ;;  %v3857_v41 = vpop.permute.xlu0 %3856  ;;  %3506 = vmatprep.mubr.f32.mxu1 %v1552_v62  ;;  %v1495_v10 = vsel %vm1469_vm5, %v4686_v47, %v3834_v1  ;;  %v1560_v61 = vsel %vm1535_vm7, %v1527_v15, %v3843_v17  ;;  %v2022_v15 = vld [vmem:[%s5490_s7 + $0x70] sm:$0xff] }
 0x1a0   : > { %v3859_v33 = vunpack.i.h.bf16 %v3857_v41  ;;  %v3858_v20 = vunpack.i.l.bf16 %v3857_v41  ;;  %v3868_v4 = vunpack.i.l.bf16 %v3867_v19  ;;  %v3869_v38 = vunpack.i.h.bf16 %v3867_v19 }
 0x1a1   : > { %3507 = vmatmul.mubr.f32.gmra.mrb[16].mxu1 %v1553_v46 }
 0x1a2   : > { %v1521_v52 = vsel %vm1502_vm6, %v1488_v26, %v3858_v20  ;;  %v1522_v37 = vsel %vm1502_vm6, %v1489_v30, %v3859_v33  ;;  %v1523_v31 = vsel %vm1502_vm6, %v1490_v55, %v3868_v4  ;;  %v1524_v23 = vsel %vm1502_vm6, %v1491_v13, %v3869_v38 }
 0x1a3   : > { %v3872_v42 = vpop.permute.xlu1 %3871  ;;  %v3877_v3 = vpop.permute.xlu0 %3876  ;;  %v1554_v5 = vsel %vm1535_vm7, %v1521_v52, %v3863_v25  ;;  %v1555_v8 = vsel %vm1535_vm7, %v1522_v37, %v3864_v7  ;;  %v1528_v33 = vsel %vm1502_vm6, %v1495_v10, %v3839_v50  ;;  %v2015_v50 = vld [vmem:[%s5490_s7 + $0x38] sm:$0xff] }
 0x1a4   : > { %v3879_v36 = vunpack.i.h.bf16 %v3877_v3  ;;  %v3878_v40 = vunpack.i.l.bf16 %v3877_v3  ;;  %3509 = vmatprep.mubr.f32.mxu1 %v1554_v5  ;;  %v3873_v56 = vunpack.i.l.bf16 %v3872_v42  ;;  %v3874_v18 = vunpack.i.h.bf16 %v3872_v42 }
 0x1a5   : > { %3510 = vmatmul.mubr.f32.gmra.mrb[18].mxu1 %v1555_v8  ;;  %v1561_v21 = vsel %vm1535_vm7, %v1528_v33, %v3844_v16  ;;  %v2017_v16 = vld [vmem:[%s5490_s7 + $0x48] sm:$0xff] }
 0x1a6   : > { %v1556_v12 = vsel %vm1535_vm7, %v1523_v31, %v3878_v40  ;;  %v1557_v28 = vsel %vm1535_vm7, %v1524_v23, %v3879_v36  ;;  %v1496_v60 = vsel %vm1469_vm5, %v4777_v11, %v3873_v56  ;;  %v1497_v38 = vsel %vm1469_vm5, %v4780_v43, %v3874_v18  ;;  %v2013_v56 = vld [vmem:[%s5490_s7 + $0x28] sm:$0xff] }
 0x1a7   : > { %v3892_v57 = vpop.permute.xlu1 %3891  ;;  %v3882_v53 = vpop.permute.xlu0 %3881  ;;  %3512 = vmatprep.mubr.f32.mxu1 %v1556_v12  ;;  %v2021_v18 = vld [vmem:[%s5490_s7 + $0x68] sm:$0xff] }
 0x1a8   : > { %v3894_v58 = vunpack.i.h.bf16 %v3892_v57  ;;  %v3893_v34 = vunpack.i.l.bf16 %v3892_v57  ;;  %v3884_v44 = vunpack.i.h.bf16 %v3882_v53  ;;  %v3883_v9 = vunpack.i.l.bf16 %v3882_v53 }
 0x1a9   : > { %3513 = vmatmul.mubr.f32.gmra.mrb[20].mxu1 %v1557_v28 }
 0x1aa   : > { %v1525_v35 = vsel %vm1502_vm6, %v1492_v22, %v3883_v9  ;;  %v1526_v6 = vsel %vm1502_vm6, %v1493_v29, %v3884_v44  ;;  %v2010_v9 = vld [vmem:[%s5490_s7 + $0x10] sm:$0xff] }
 0x1ab   : > { %v3897_v62 = vpop.permute.xlu1 %3896  ;;  %v3887_v27 = vpop.permute.xlu0 %3886  ;;  %v1558_v19 = vsel %vm1535_vm7, %v1525_v35, %v3893_v34  ;;  %v1559_v41 = vsel %vm1535_vm7, %v1526_v6, %v3894_v58  ;;  %v3658_v35 = vpack.c.bf16 %v2015_v50, %v2014_v59  ;;  %v2016_v6 = vld [vmem:[%s5490_s7 + $0x40] sm:$0xff] }
 0x1ac   : > { %v3888_v26 = vunpack.i.l.bf16 %v3887_v27  ;;  %3515 = vmatprep.mubr.f32.mxu1 %v1558_v19  ;;  %v3898_v45 = vunpack.i.l.bf16 %v3897_v62  ;;  %v3889_v30 = vunpack.i.h.bf16 %v3887_v27  ;;  %v3899_v7 = vunpack.i.h.bf16 %v3897_v62  ;;  %v2018_v27 = vld [vmem:[%s5490_s7 + $0x50] sm:$0xff]  ;;  %v2019_v19 = vld [vmem:[%s5490_s7 + $0x58] sm:$0xff] }
 0x1ad   : > { %3516 = vmatmul.mubr.f32.gmra.mrb[22].mxu1 %v1559_v41  ;;  %v3662_v62 = vpack.c.bf16 %v2017_v16, %v2016_v6  ;;  %v2020_v41 = vld [vmem:[%s5490_s7 + $0x60] sm:$0xff]  ;;  %v3666_v10 = vpack.c.bf16 %v2019_v19, %v2018_v27 }
 0x1ae   : > { %3518 = vmatprep.mubr.f32.mxu1 %v1560_v61  ;;  %v1529_v20 = vsel %vm1502_vm6, %v1496_v60, %v3888_v26  ;;  %v1530_v11 = vsel %vm1502_vm6, %v1497_v38, %v3889_v30  ;;  %v3670_v26 = vpack.c.bf16 %v2021_v18, %v2020_v41  ;;  %v5095_v61 = vld [vmem:[%s5489_s6] ss:$0 sm:$0xff] }
 0x1af   : > { %v3907_v46 = vpop.permute.xlu1 %3906  ;;  %v3902_v47 = vpop.permute.xlu0 %3901  ;;  %v1562_v37 = vsel %vm1535_vm7, %v1529_v20, %v3898_v45  ;;  %v1563_v43 = vsel %vm1535_vm7, %v1530_v11, %v3899_v7  ;;  %v2023_v45 = vld [vmem:[%s5490_s7 + $0x78] sm:$0xff] }
 0x1b0   : > { %v3904_v25 = vunpack.i.h.bf16 %v3902_v47  ;;  %v3903_v4 = vunpack.i.l.bf16 %v3902_v47  ;;  %v3908_v52 = vunpack.i.l.bf16 %v3907_v46  ;;  %v3909_v24 = vunpack.i.h.bf16 %v3907_v46 }
 0x1b1   : > { %3519 = vmatmul.mubr.f32.gmra.mrb[24].mxu1 %v1561_v21  ;;  %v3674_v30 = vpack.c.bf16 %v2023_v45, %v2022_v15 }
 0x1b2   : > { %3521 = vmatprep.mubr.f32.mxu1 %v1562_v37  ;;  %v1498_v42 = vsel %vm1469_vm5, %v4796_v48, %v3903_v4  ;;  %v1499_v8 = vsel %vm1469_vm5, %v4800_v49, %v3904_v25 }
 0x1b3   : > { %v3917_v3 = vpop.permute.xlu1 %3916  ;;  %v3912_v5 = vpop.permute.xlu0 %3911  ;;  %v1531_v0 = vsel %vm1502_vm6, %v1498_v42, %v3908_v52  ;;  %v1532_v13 = vsel %vm1502_vm6, %v1499_v8, %v3909_v24 }
 0x1b4   : > { %v3914_v36 = vunpack.i.h.bf16 %v3912_v5  ;;  %v3913_v40 = vunpack.i.l.bf16 %v3912_v5  ;;  %v3919_v55 = vunpack.i.h.bf16 %v3917_v3  ;;  %v3918_v32 = vunpack.i.l.bf16 %v3917_v3 }
 0x1b5   : > { %3522 = vmatmul.mubr.f32.gmra.mrb[26].mxu1 %v1563_v43 }
 0x1b6   : > { %v1564_v31 = vsel %vm1535_vm7, %v1531_v0, %v3913_v40  ;;  %v1565_v23 = vsel %vm1535_vm7, %v1532_v13, %v3914_v36  ;;  %v1500_v53 = vsel %vm1469_vm5, %v4819_v39, %v3918_v32  ;;  %v1501_v28 = vsel %vm1469_vm5, %v4822_v2, %v3919_v55  ;;  %v2011_v39 = vld [vmem:[%s5490_s7 + $0x18] sm:$0xff]  ;;  %v2012_v2 = vld [vmem:[%s5490_s7 + $0x20] sm:$0xff] }
 0x1b7   : > { %v3927_v12 = vpop.permute.xlu1 %3926  ;;  %v3922_v48 = vpop.permute.xlu0 %3921  ;;  %3524 = vmatprep.mubr.f32.mxu1 %v1564_v31  ;;  %v3650_v17 = vpack.c.bf16 %v2011_v39, %v2010_v9  ;;  %v3654_v29 = vpack.c.bf16 %v2013_v56, %v2012_v2 }
 0x1b8   : > { %v3929_v63 = vunpack.i.h.bf16 %v3927_v12  ;;  %v3928_v49 = vunpack.i.l.bf16 %v3927_v12  ;;  %v3924_v1 = vunpack.i.h.bf16 %v3922_v48  ;;  %v3923_v57 = vunpack.i.l.bf16 %v3922_v48 }
 0x1b9   : > { %3525 = vmatmul.mubr.f32.gmra.mrb[28].mxu1 %v1565_v23  ;;  %3651 = vmatprep.subr.bf16.mxu0 %v3650_v17 }
 0x1ba   : > { %v1533_v22 = vsel %vm1502_vm6, %v1500_v53, %v3923_v57  ;;  %v1534_v58 = vsel %vm1502_vm6, %v1501_v28, %v3924_v1  ;;  %3653 = vmatpush3.bf16.msra.mxu0 %v3650_v17 }
 0x1bb   : > { %v1566_v34 = vsel %vm1535_vm7, %v1533_v22, %v3928_v49  ;;  %v1567_v44 = vsel %vm1535_vm7, %v1534_v58, %v3929_v63  ;;  %3655 = vmatprep.subr.bf16.mxu0 %v3654_v29 }
 0x1bc   : > { %3527 = vmatprep.mubr.f32.mxu1 %v1566_v34 }
 0x1bd   : > { %3528 = vmatmul.mubr.f32.gmra.mrb[30].mxu1 %v1567_v44 }
 0x1be   : > { %3657 = vmatpush3.bf16.msra.mxu0 %v3654_v29 }
 0x1bf   : > { %3659 = vmatprep.subr.bf16.mxu0 %v3658_v35 }
 0x1c2   : > { %3661 = vmatpush3.bf16.msra.mxu0 %v3658_v35 }
 0x1c3   : > { %3663 = vmatprep.subr.bf16.mxu0 %v3662_v62 }
 0x1c6   : > { %3665 = vmatpush3.bf16.msra.mxu0 %v3662_v62 }
 0x1c7   : > { %3667 = vmatprep.subr.bf16.mxu0 %v3666_v10 }
 0x1ca   : > { %3669 = vmatpush3.bf16.msra.mxu0 %v3666_v10 }
 0x1cb   : > { %3671 = vmatprep.subr.bf16.mxu0 %v3670_v26 }
 0x1ce   : > { %3673 = vmatpush3.bf16.msra.mxu0 %v3670_v26 }
 0x1cf   : > { %3675 = vmatprep.subr.bf16.mxu0 %v3674_v30 }
 0x1d2   : > { %3677 = vmatpush3.bf16.msra.mxu0 %v3674_v30 }
 0x248   : > { %v3484_v60 = vpop.f32.mrb[0].mxu1 }
 0x249   : > { %v1663_v33 = vadd.f32 %v3484_v60, %v5095_v61  ;;  %v1657_v20 = vpop.f32.mrb[1].mxu1 }
 0x24a   : > { %v1658_v46 = vadd.f32 %v5095_v61, %v1657_v20 }
 0x24b   : > { %v3271_v47 = vmul.f32 -1.442695, %v1663_v33 }
 0x24c   : > { %v3270_v21 = vmul.f32 -1.442695, %v1658_v46 }
 0x24d   : > { %3930 = vpow2.f32 %v3271_v47 }
 0x24e   : > { %3932 = vpow2.f32 %v3270_v21 }
 0x254   : > { %v3487_v7 = vpop.f32.mrb[2].mxu1 }
 0x255   : > { %v1673_v25 = vadd.f32 %v3487_v7, %v5095_v61  ;;  %v1667_v4 = vpop.f32.mrb[3].mxu1 }
 0x256   : > { %v1668_v38 = vadd.f32 %v5095_v61, %v1667_v4 }
 0x257   : > { %v3931_v52 = vpop.eup %3930  ;;  %v3273_v37 = vmul.f32 -1.442695, %v1673_v25 }
 0x258   : > { %v3933_v11 = vpop.eup %3932  ;;  %v1913_v24 = vadd.f32 1.0, %v3931_v52  ;;  %v3272_v42 = vmul.f32 -1.442695, %v1668_v38  ;;  %v3490_v3 = vpop.f32.mrb[4].mxu1 }
 0x259   : > { %v1912_v5 = vadd.f32 1.0, %v3933_v11  ;;  %3934 = vpow2.f32 %v3273_v37  ;;  %v1683_v8 = vadd.f32 %v3490_v3, %v5095_v61  ;;  %v1677_v36 = vpop.f32.mrb[5].mxu1 }
 0x25a   : > { %3936 = vrcp.f32 %v1913_v24  ;;  %v1678_v40 = vadd.f32 %v5095_v61, %v1677_v36 }
 0x25b   : > { %3938 = vrcp.f32 %v1912_v5  ;;  %v3275_v43 = vmul.f32 -1.442695, %v1683_v8 }
 0x25c   : > { %3940 = vpow2.f32 %v3272_v42  ;;  %v3274_v55 = vmul.f32 -1.442695, %v1678_v40 }
 0x25d   : > { %3942 = vpow2.f32 %v3275_v43 }
 0x25e   : > { %3944 = vpow2.f32 %v3274_v55 }
 0x260   : > { %v3493_v32 = vpop.f32.mrb[6].mxu1 }
 0x261   : > { %v1693_v0 = vadd.f32 %v3493_v32, %v5095_v61  ;;  %v1687_v31 = vpop.f32.mrb[7].mxu1 }
 0x262   : > { %v1688_v13 = vadd.f32 %v5095_v61, %v1687_v31 }
 0x263   : > { %v3935_v12 = vpop.eup %3934  ;;  %v3277_v48 = vmul.f32 -1.442695, %v1693_v0 }
 0x264   : > { %v3937_v23 = vpop.eup %3936  ;;  %v1915_v63 = vadd.f32 1.0, %v3935_v12  ;;  %v3276_v49 = vmul.f32 -1.442695, %v1688_v13  ;;  %v3496_v1 = vpop.f32.mrb[8].mxu1 }
 0x265   : > { %v3939_v57 = vpop.eup %3938  ;;  %3946 = vpow2.f32 %v3277_v48  ;;  %v1703_v53 = vadd.f32 %v3496_v1, %v5095_v61  ;;  %v1697_v28 = vpop.f32.mrb[9].mxu1 }
 0x266   : > { %v3941_v22 = vpop.eup %3940  ;;  %v1698_v58 = vadd.f32 %v5095_v61, %v1697_v28  ;;  %3562 = vmatprep.mubr.f32.mxu0 %v3939_v57  ;;  %3948 = vpow2.f32 %v3276_v49 }
 0x267   : > { %v3943_v34 = vpop.eup %3942  ;;  %v1914_v44 = vadd.f32 1.0, %v3941_v22  ;;  %3563 = vmatmul.mubr.f32.vlgmr.msra.gmra.mrb[4].mxu0 %v3937_v23  ;;  %3950 = vrcp.f32 %v1915_v63  ;;  %v3279_v2 = vmul.f32 -1.442695, %v1703_v53 }
 0x268   : > { %v3945_v9 = vpop.eup %3944  ;;  %v1917_v39 = vadd.f32 1.0, %v3943_v34  ;;  %v3499_v17 = vpop.f32.mrb[10].mxu1  ;;  %v3278_v29 = vmul.f32 -1.442695, %v1698_v58 }
 0x269   : > { %3952 = vrcp.f32 %v1914_v44  ;;  %v1916_v56 = vadd.f32 1.0, %v3945_v9  ;;  %v1713_v59 = vadd.f32 %v3499_v17, %v5095_v61  ;;  %v1707_v50 = vpop.f32.mrb[11].mxu1 }
 0x26a   : > { %3954 = vrcp.f32 %v1917_v39  ;;  %v1708_v35 = vadd.f32 %v5095_v61, %v1707_v50 }
 0x26b   : > { %3956 = vrcp.f32 %v1916_v56  ;;  %v3281_v6 = vmul.f32 -1.442695, %v1713_v59 }
 0x26c   : > { %3958 = vpow2.f32 %v3279_v2  ;;  %v3280_v16 = vmul.f32 -1.442695, %v1708_v35  ;;  %v3502_v62 = vpop.f32.mrb[12].mxu1 }
 0x26d   : > { %3960 = vpow2.f32 %v3278_v29  ;;  %v1723_v27 = vadd.f32 %v3502_v62, %v5095_v61  ;;  %v1717_v19 = vpop.f32.mrb[13].mxu1 }
 0x26e   : > { %3962 = vpow2.f32 %v3281_v6  ;;  %v1718_v41 = vadd.f32 %v5095_v61, %v1717_v19 }
 0x26f   : > { %v3947_v10 = vpop.eup %3946  ;;  %3964 = vpow2.f32 %v3280_v16  ;;  %v3283_v18 = vmul.f32 -1.442695, %v1723_v27 }
 0x270   : > { %v1919_v26 = vadd.f32 1.0, %v3947_v10  ;;  %v3282_v15 = vmul.f32 -1.442695, %v1718_v41  ;;  %v3505_v45 = vpop.f32.mrb[14].mxu1  ;;  %v3949_v30 = vpop.eup %3948 }
 0x271   : > { %3966 = vpow2.f32 %v3283_v18  ;;  %v1733_v60 = vadd.f32 %v3505_v45, %v5095_v61  ;;  %v1727_v33 = vpop.f32.mrb[15].mxu1  ;;  %v3951_v20 = vpop.eup %3950  ;;  %v1918_v46 = vadd.f32 1.0, %v3949_v30 }
 0x272   : > { %3968 = vrcp.f32 %v1919_v26  ;;  %v1728_v47 = vadd.f32 %v5095_v61, %v1727_v33 }
 0x273   : > { %v3953_v21 = vpop.eup %3952  ;;  %3970 = vpow2.f32 %v3282_v15  ;;  %v3285_v7 = vmul.f32 -1.442695, %v1733_v60 }
 0x274   : > { %v3955_v25 = vpop.eup %3954  ;;  %3972 = vrcp.f32 %v1918_v46  ;;  %v3284_v4 = vmul.f32 -1.442695, %v1728_v47  ;;  %3565 = vmatprep.mubr.f32.mxu0 %v3953_v21  ;;  %v3508_v38 = vpop.f32.mrb[16].mxu1 }
 0x275   : > { %v3957_v52 = vpop.eup %3956  ;;  %3974 = vpow2.f32 %v3285_v7  ;;  %3566 = vmatmul.mubr.f32.gmra.mrb[6].mxu0 %v3951_v20  ;;  %v1743_v37 = vadd.f32 %v3508_v38, %v5095_v61  ;;  %v1737_v11 = vpop.f32.mrb[17].mxu1 }
 0x276   : > { %v3959_v24 = vpop.eup %3958  ;;  %3976 = vpow2.f32 %v3284_v4  ;;  %3568 = vmatprep.mubr.f32.mxu0 %v3957_v52  ;;  %v1738_v5 = vadd.f32 %v5095_v61, %v1737_v11 }
 0x277   : > { %v3961_v42 = vpop.eup %3960  ;;  %v1921_v3 = vadd.f32 1.0, %v3959_v24  ;;  %v3287_v55 = vmul.f32 -1.442695, %v1743_v37 }
 0x278   : > { %v3963_v8 = vpop.eup %3962  ;;  %v1920_v36 = vadd.f32 1.0, %v3961_v42  ;;  %v3511_v40 = vpop.f32.mrb[18].mxu1  ;;  %v3286_v48 = vmul.f32 -1.442695, %v1738_v5 }
 0x279   : > { %v3965_v43 = vpop.eup %3964  ;;  %3569 = vmatmul.mubr.f32.gmra.mrb[8].mxu0 %v3955_v25  ;;  %v1753_v32 = vadd.f32 %v3511_v40, %v5095_v61  ;;  %v1747_v0 = vpop.f32.mrb[19].mxu1  ;;  %v1923_v31 = vadd.f32 1.0, %v3963_v8 }
 0x27a   : > { %3978 = vrcp.f32 %v1920_v36  ;;  %v1922_v13 = vadd.f32 1.0, %v3965_v43  ;;  %v1748_v63 = vadd.f32 %v5095_v61, %v1747_v0 }
 0x27b   : > { %v3967_v12 = vpop.eup %3966  ;;  %3980 = vrcp.f32 %v1921_v3  ;;  %v3289_v57 = vmul.f32 -1.442695, %v1753_v32 }
 0x27c   : > { %v3969_v23 = vpop.eup %3968  ;;  %3982 = vrcp.f32 %v1922_v13  ;;  %v3514_v49 = vpop.f32.mrb[20].mxu1  ;;  %v1925_v58 = vadd.f32 1.0, %v3967_v12  ;;  %v3288_v2 = vmul.f32 -1.442695, %v1748_v63 }
 0x27d   : > { %v3971_v1 = vpop.eup %3970  ;;  %3984 = vpow2.f32 %v3287_v55  ;;  %v1763_v53 = vadd.f32 %v3514_v49, %v5095_v61  ;;  %v1757_v28 = vpop.f32.mrb[21].mxu1 }
 0x27e   : > { %v3973_v22 = vpop.eup %3972  ;;  %3986 = vrcp.f32 %v1923_v31  ;;  %v1924_v34 = vadd.f32 1.0, %v3971_v1  ;;  %v1758_v44 = vadd.f32 %v5095_v61, %v1757_v28 }
 0x27f   : > { %v3975_v9 = vpop.eup %3974  ;;  %3988 = vpow2.f32 %v3286_v48  ;;  %3571 = vmatprep.mubr.f32.mxu0 %v3973_v22  ;;  %v3291_v29 = vmul.f32 -1.442695, %v1763_v53 }
 0x280   : > { %v3977_v39 = vpop.eup %3976  ;;  %3990 = vrcp.f32 %v1924_v34  ;;  %3572 = vmatmul.mubr.f32.gmra.mrb[10].mxu0 %v3969_v23  ;;  %v3517_v17 = vpop.f32.mrb[22].mxu1  ;;  %v3290_v35 = vmul.f32 -1.442695, %v1758_v44  ;;  %v1927_v16 = vadd.f32 1.0, %v3975_v9 }
 0x281   : > { %v1926_v56 = vadd.f32 1.0, %v3977_v39  ;;  %3992 = vpow2.f32 %v3289_v57  ;;  %v1773_v59 = vadd.f32 %v3517_v17, %v5095_v61  ;;  %v1767_v50 = vpop.f32.mrb[23].mxu1 }
 0x282   : > { %3994 = vrcp.f32 %v1925_v58  ;;  %v1768_v6 = vadd.f32 %v5095_v61, %v1767_v50 }
 0x283   : > { %3996 = vrcp.f32 %v1926_v56  ;;  %v3293_v10 = vmul.f32 -1.442695, %v1773_v59 }
 0x284   : > { %v3979_v62 = vpop.eup %3978  ;;  %3998 = vpow2.f32 %v3288_v2  ;;  %v3292_v27 = vmul.f32 -1.442695, %v1768_v6  ;;  %v3520_v19 = vpop.f32.mrb[24].mxu1 }
 0x285   : > { %v3981_v41 = vpop.eup %3980  ;;  %4000 = vpow2.f32 %v3291_v29  ;;  %3574 = vmatprep.mubr.f32.mxu0 %v3979_v62  ;;  %v1783_v18 = vadd.f32 %v3520_v19, %v5095_v61  ;;  %v1777_v26 = vpop.f32.mrb[25].mxu1 }
 0x286   : > { %v3983_v15 = vpop.eup %3982  ;;  %4002 = vpow2.f32 %v3290_v35  ;;  %3575 = vmatmul.mubr.f32.gmra.mrb[12].mxu0 %v3981_v41  ;;  %v1778_v45 = vadd.f32 %v5095_v61, %v1777_v26 }
 0x287   : > { %v3985_v30 = vpop.eup %3984  ;;  %4004 = vrcp.f32 %v1927_v16  ;;  %v3295_v60 = vmul.f32 -1.442695, %v1783_v18  ;;  %3577 = vmatprep.mubr.f32.mxu0 %v3983_v15 }
 0x288   : > { %v3987_v33 = vpop.eup %3986  ;;  %4006 = vpow2.f32 %v3292_v27  ;;  %v3294_v20 = vmul.f32 -1.442695, %v1778_v45  ;;  %v3523_v46 = vpop.f32.mrb[26].mxu1  ;;  %v1929_v21 = vadd.f32 1.0, %v3985_v30 }
 0x289   : > { %v3989_v47 = vpop.eup %3988  ;;  %4008 = vpow2.f32 %v3293_v10  ;;  %v1793_v7 = vadd.f32 %v3523_v46, %v5095_v61  ;;  %v1787_v25 = vpop.f32.mrb[27].mxu1 }
 0x28a   : > { %v3991_v4 = vpop.eup %3990  ;;  %v1928_v38 = vadd.f32 1.0, %v3989_v47  ;;  %4010 = vpow2.f32 %v3295_v60  ;;  %3578 = vmatmul.mubr.f32.gmra.mrb[14].mxu0 %v3987_v33  ;;  %v1788_v52 = vadd.f32 %v5095_v61, %v1787_v25 }
 0x28b   : > { %v3993_v37 = vpop.eup %3992  ;;  %4012 = vpow2.f32 %v3294_v20  ;;  %3580 = vmatprep.mubr.f32.mxu0 %v3991_v4  ;;  %v3297_v24 = vmul.f32 -1.442695, %v1793_v7 }
 0x28c   : > { %v3995_v11 = vpop.eup %3994  ;;  %4014 = vrcp.f32 %v1928_v38  ;;  %v3296_v42 = vmul.f32 -1.442695, %v1788_v52  ;;  %v3526_v3 = vpop.f32.mrb[28].mxu1  ;;  %v1931_v40 = vadd.f32 1.0, %v3993_v37  ;;  %v5132_v37 = vld [vmem:[%s5491_s8] ss:$0 sm:$0xff] }
 0x28d   : > { %v3997_v5 = vpop.eup %3996  ;;  %4016 = vrcp.f32 %v1929_v21  ;;  %v1797_v8 = vpop.f32.mrb[29].mxu1  ;;  %v1803_v32 = vadd.f32 %v3526_v3, %v5095_v61 }
 0x28e   : > { %v3999_v36 = vpop.eup %3998  ;;  %3581 = vmatmul.mubr.f32.gmra.mrb[16].mxu0 %v3995_v11  ;;  %4018 = vpow2.f32 %v3296_v42  ;;  %v1798_v48 = vadd.f32 %v5095_v61, %v1797_v8 }
 0x28f   : > { %v4001_v43 = vpop.eup %4000  ;;  %v1930_v55 = vadd.f32 1.0, %v3999_v36  ;;  %3583 = vmatprep.mubr.f32.mxu0 %v3997_v5  ;;  %4020 = vpow2.f32 %v3297_v24  ;;  %v3299_v53 = vmul.f32 -1.442695, %v1803_v32 }
 0x290   : > { %v4003_v0 = vpop.eup %4002  ;;  %v3529_v31 = vpop.f32.mrb[30].mxu1  ;;  %v1933_v49 = vadd.f32 1.0, %v4001_v43  ;;  %v3298_v34 = vmul.f32 -1.442695, %v1798_v48 }
 0x291   : > { %v4005_v13 = vpop.eup %4004  ;;  %4022 = vrcp.f32 %v1930_v55  ;;  %v1932_v12 = vadd.f32 1.0, %v4003_v0  ;;  %v1807_v23 = vpop.f32.mrb[31].mxu1  ;;  %v1813_v28 = vadd.f32 %v3529_v31, %v5095_v61 }
 0x292   : > { %v4007_v63 = vpop.eup %4006  ;;  %4024 = vrcp.f32 %v1931_v40  ;;  %3584 = vmatmul.mubr.f32.gmra.mrb[18].mxu0 %v4005_v13  ;;  %v1808_v44 = vadd.f32 %v5095_v61, %v1807_v23 }
 0x293   : > { %v4009_v1 = vpop.eup %4008  ;;  %4026 = vrcp.f32 %v1932_v12  ;;  %v1934_v57 = vadd.f32 1.0, %v4007_v63  ;;  %v3301_v56 = vmul.f32 -1.442695, %v1813_v28 }
 0x294   : > { %v4011_v22 = vpop.eup %4010  ;;  %v1935_v39 = vadd.f32 1.0, %v4009_v1  ;;  %v3300_v59 = vmul.f32 -1.442695, %v1808_v44 }
 0x295   : > { %v4013_v58 = vpop.eup %4012  ;;  %4028 = vrcp.f32 %v1934_v57  ;;  %v1937_v35 = vadd.f32 1.0, %v4011_v22 }
 0x296   : > { %v4015_v9 = vpop.eup %4014  ;;  %4030 = vrcp.f32 %v1933_v49  ;;  %v1936_v2 = vadd.f32 1.0, %v4013_v58  ;;  %v5145_v58 = vld [vmem:[%s5492_s9] ss:$0 sm:$0xff] }
 0x297   : > { %v4017_v17 = vpop.eup %4016  ;;  %4032 = vpow2.f32 %v3299_v53  ;;  %3586 = vmatprep.mubr.f32.mxu0 %v4015_v9 }
 0x298   : > { %4034 = vrcp.f32 %v1936_v2  ;;  %3587 = vmatmul.mubr.f32.gmra.mrb[20].mxu0 %v4017_v17  ;;  %v4019_v29 = vpop.eup %4018 }
 0x299   : > { %4036 = vpow2.f32 %v3298_v34  ;;  %v4021_v50 = vpop.eup %4020  ;;  %v1938_v6 = vadd.f32 1.0, %v4019_v29 }
 0x29a   : > { %4038 = vrcp.f32 %v1935_v39  ;;  %v1939_v27 = vadd.f32 1.0, %v4021_v50 }
 0x29b   : > { %v4023_v16 = vpop.eup %4022  ;;  %4040 = vpow2.f32 %v3301_v56 }
 0x29c   : > { %v4025_v61 = vpop.eup %4024  ;;  %4042 = vrcp.f32 %v1938_v6  ;;  %3589 = vmatprep.mubr.f32.mxu0 %v4023_v16 }
 0x29d   : > { %v4027_v62 = vpop.eup %4026  ;;  %4044 = vpow2.f32 %v3300_v59  ;;  %3590 = vmatmul.mubr.f32.gmra.mrb[22].mxu0 %v4025_v61 }
 0x29e   : > { %4046 = vrcp.f32 %v1937_v35  ;;  %3592 = vmatprep.mubr.f32.mxu0 %v4027_v62 }
 0x29f   : > { %v4029_v19 = vpop.eup %4028  ;;  %4048 = vrcp.f32 %v1939_v27 }
 0x2a0   : > { %v4031_v41 = vpop.eup %4030 }
 0x2a1   : > { %v4033_v10 = vpop.eup %4032  ;;  %3593 = vmatmul.mubr.f32.gmra.mrb[24].mxu0 %v4031_v41 }
 0x2a2   : > { %v4035_v18 = vpop.eup %4034  ;;  %3595 = vmatprep.mubr.f32.mxu0 %v4029_v19  ;;  %v1941_v15 = vadd.f32 1.0, %v4033_v10 }
 0x2a3   : > { %v4037_v26 = vpop.eup %4036 }
 0x2a4   : > { %v4039_v45 = vpop.eup %4038  ;;  %v1940_v30 = vadd.f32 1.0, %v4037_v26 }
 0x2a5   : > { %v4041_v60 = vpop.eup %4040  ;;  %3596 = vmatmul.mubr.f32.gmra.mrb[26].mxu0 %v4039_v45 }
 0x2a6   : > { %v4043_v33 = vpop.eup %4042  ;;  %4050 = vrcp.f32 %v1940_v30  ;;  %3598 = vmatprep.mubr.f32.mxu0 %v4035_v18  ;;  %v1943_v46 = vadd.f32 1.0, %v4041_v60 }
 0x2a7   : > { %v4045_v20 = vpop.eup %4044  ;;  %4052 = vrcp.f32 %v1941_v15 }
 0x2a8   : > { %v4047_v47 = vpop.eup %4046  ;;  %v1942_v21 = vadd.f32 1.0, %v4045_v20 }
 0x2a9   : > { %3599 = vmatmul.mubr.f32.gmra.mrb[28].mxu0 %v4047_v47  ;;  %v4049_v7 = vpop.eup %4048 }
 0x2aa   : > { %4054 = vrcp.f32 %v1942_v21  ;;  %3601 = vmatprep.mubr.f32.mxu0 %v4043_v33 }
 0x2ab   : > { %4056 = vrcp.f32 %v1943_v46 }
 0x2ad   : > { %3602 = vmatmul.mubr.f32.gmra.mrb[30].mxu0 %v4049_v7 }
 0x2b0   : > { %v4051_v25 = vpop.eup %4050 }
 0x2b1   : > { %v4053_v4 = vpop.eup %4052  ;;  %3604 = vmatprep.mubr.f32.mxu0 %v4051_v25 }
 0x2b2   : > { %3605 = vmatmul.mubr.f32.gmra.mrb[32].mxu0 %v4053_v4 }
 0x2b4   : > { %v4055_v38 = vpop.eup %4054 }
 0x2b5   : > { %v4057_v52 = vpop.eup %4056  ;;  %3607 = vmatprep.mubr.f32.mxu0 %v4055_v38 }
 0x2b6   : > { %3608 = vmatmul.mubr.f32.gmra.mrb[34].mxu0 %v4057_v52 }
 0x33a   : > { %v3564_v11 = vpop.f32.mrb[4].mxu0 }
 0x33b   : > { %v2103_v24 = vadd.f32 %v3564_v11, %v5132_v37  ;;  %v2097_v42 = vpop.f32.mrb[5].mxu0 }
 0x33c   : > { %v2098_v3 = vadd.f32 %v5132_v37, %v2097_v42 }
 0x33d   : > { %v3304_v5 = vmul.f32 -1.442695, %v2103_v24 }
 0x33e   : > { %v3303_v8 = vmul.f32 -1.442695, %v2098_v3 }
 0x33f   : > { %4058 = vpow2.f32 %v3304_v5 }
 0x340   : > { %4060 = vpow2.f32 %v3303_v8 }
 0x348   : > { %v3567_v36 = vpop.f32.mrb[6].mxu0 }
 0x349   : > { %v4059_v40 = vpop.eup %4058  ;;  %v2113_v43 = vadd.f32 %v3567_v36, %v5132_v37  ;;  %v2107_v55 = vpop.f32.mrb[7].mxu0 }
 0x34a   : > { %v4061_v32 = vpop.eup %4060  ;;  %v2353_v0 = vadd.f32 1.0, %v4059_v40  ;;  %v2108_v31 = vadd.f32 %v5132_v37, %v2107_v55 }
 0x34b   : > { %v2352_v13 = vadd.f32 1.0, %v4061_v32  ;;  %v3306_v12 = vmul.f32 -1.442695, %v2113_v43 }
 0x34c   : > { %4062 = vrcp.f32 %v2353_v0  ;;  %v3305_v48 = vmul.f32 -1.442695, %v2108_v31  ;;  %v3570_v23 = vpop.f32.mrb[8].mxu0 }
 0x34d   : > { %4064 = vrcp.f32 %v2352_v13  ;;  %v2123_v63 = vadd.f32 %v3570_v23, %v5132_v37  ;;  %v2117_v49 = vpop.f32.mrb[9].mxu0 }
 0x34e   : > { %4066 = vpow2.f32 %v3306_v12  ;;  %v2118_v1 = vadd.f32 %v5132_v37, %v2117_v49 }
 0x34f   : > { %4068 = vpow2.f32 %v3305_v48  ;;  %v3308_v57 = vmul.f32 -1.442695, %v2123_v63 }
 0x350   : > { %v3307_v53 = vmul.f32 -1.442695, %v2118_v1 }
 0x351   : > { %4070 = vpow2.f32 %v3308_v57 }
 0x352   : > { %4072 = vpow2.f32 %v3307_v53 }
 0x353   : > { %v5140_v28 = vpop.f32.mrb[10].mxu0 }
 0x354   : > { %v2127_v22 = vpop.f32.mrb[11].mxu0 }
 0x355   : > { %v2128_v34 = vadd.f32 %v5132_v37, %v2127_v22  ;;  %v2133_v22 = vadd.f32 %v5140_v28, %v5132_v37 }
 0x356   : > { %v4063_v44 = vpop.eup %4062 }
 0x357   : > { %v4065_v9 = vpop.eup %4064  ;;  %v3309_v39 = vmul.f32 -1.442695, %v2128_v34  ;;  %v2456_v2 = vmul.f32 %v4063_v44, %v5145_v58 }
 0x358   : > { %v4067_v17 = vpop.eup %4066  ;;  %v2455_v56 = vmul.f32 %v4065_v9, %v5145_v58 }
 0x359   : > { %v4069_v29 = vpop.eup %4068  ;;  %v2355_v59 = vadd.f32 1.0, %v4067_v17  ;;  %4074 = vpow2.f32 %v3309_v39  ;;  %v3576_v50 = vpop.f32.mrb[12].mxu0  ;;  %2489 = vadd.xlane.f32.xlu1 %v2456_v2 }
 0x35a   : > { %v2354_v35 = vadd.f32 1.0, %v4069_v29  ;;  %v2143_v6 = vadd.f32 %v3576_v50, %v5132_v37  ;;  %v2137_v16 = vpop.f32.mrb[13].mxu0  ;;  %2487 = vadd.xlane.f32.xlu0 %v2455_v56 }
 0x35b   : > { %v4071_v61 = vpop.eup %4070  ;;  %4076 = vrcp.f32 %v2355_v59  ;;  %v2138_v62 = vadd.f32 %v5132_v37, %v2137_v16 }
 0x35c   : > { %v2357_v27 = vadd.f32 1.0, %v4071_v61  ;;  %v3312_v19 = vmul.f32 -1.442695, %v2143_v6  ;;  %4078 = vrcp.f32 %v2354_v35  ;;  %v4073_v18 = vpop.eup %4072  ;;  %v3310_v35 = vmul.f32 -1.442695, %v2133_v22 }
 0x35d   : > { %v3311_v41 = vmul.f32 -1.442695, %v2138_v62  ;;  %v3579_v10 = vpop.f32.mrb[14].mxu0  ;;  %v2356_v60 = vadd.f32 1.0, %v4073_v18 }
 0x35e   : > { %v2153_v26 = vadd.f32 %v3579_v10, %v5132_v37  ;;  %v2147_v15 = vpop.f32.mrb[15].mxu0  ;;  %4080 = vrcp.f32 %v2357_v27 }
 0x35f   : > { %v2148_v45 = vadd.f32 %v5132_v37, %v2147_v15  ;;  %4082 = vpow2.f32 %v3312_v19 }
 0x360   : > { %v3314_v30 = vmul.f32 -1.442695, %v2153_v26  ;;  %4084 = vpow2.f32 %v3311_v41 }
 0x361   : > { %v3582_v33 = vpop.f32.mrb[16].mxu0  ;;  %v3313_v20 = vmul.f32 -1.442695, %v2148_v45 }
 0x362   : > { %4086 = vpow2.f32 %v3314_v30  ;;  %v2163_v46 = vadd.f32 %v3582_v33, %v5132_v37  ;;  %v2157_v47 = vpop.f32.mrb[17].mxu0 }
 0x363   : > { %v4075_v21 = vpop.eup %4074  ;;  %v2158_v7 = vadd.f32 %v5132_v37, %v2157_v47  ;;  %4088 = vrcp.f32 %v2356_v60 }
 0x364   : > { %v2358_v4 = vadd.f32 1.0, %v4075_v21  ;;  %4090 = vpow2.f32 %v3313_v20  ;;  %v3316_v52 = vmul.f32 -1.442695, %v2163_v46 }
 0x365   : > { %v4077_v25 = vpop.eup %4076  ;;  %v3585_v38 = vpop.f32.mrb[18].mxu0  ;;  %v3315_v3 = vmul.f32 -1.442695, %v2158_v7 }
 0x366   : > { %v2167_v11 = vpop.f32.mrb[19].mxu0  ;;  %v2458_v24 = vmul.f32 %v4077_v25, %v5145_v58  ;;  %v4079_v42 = vpop.eup %4078  ;;  %4092 = vrcp.f32 %v2358_v4  ;;  %v2173_v28 = vadd.f32 %v3585_v38, %v5132_v37 }
 0x367   : > { %v2168_v8 = vadd.f32 %v5132_v37, %v2167_v11  ;;  %4094 = vpow2.f32 %v3316_v52  ;;  %v2457_v40 = vmul.f32 %v4079_v42, %v5145_v58 }
 0x368   : > { %2493 = vadd.xlane.f32.xlu1 %v2458_v24  ;;  %v4081_v5 = vpop.eup %4080  ;;  %4096 = vpow2.f32 %v3315_v3  ;;  %v3318_v33 = vmul.f32 -1.442695, %v2173_v28 }
 0x369   : > { %v4083_v36 = vpop.eup %4082  ;;  %v3317_v12 = vmul.f32 -1.442695, %v2168_v8  ;;  %v2460_v63 = vmul.f32 %v4081_v5, %v5145_v58 }
 0x36a   : > { %v4085_v43 = vpop.eup %4084  ;;  %v2361_v55 = vadd.f32 1.0, %v4083_v36 }
 0x36b   : > { %v3588_v32 = vpop.f32.mrb[20].mxu0  ;;  %v2360_v31 = vadd.f32 1.0, %v4085_v43 }
 0x36c   : > { %v4087_v0 = vpop.eup %4086  ;;  %v2177_v13 = vpop.f32.mrb[21].mxu0  ;;  %2491 = vadd.xlane.f32.xlu1 %v2457_v40  ;;  %4098 = vrcp.f32 %v2361_v55  ;;  %v2183_v48 = vadd.f32 %v3588_v32, %v5132_v37 }
 0x36d   : > { %v2178_v23 = vadd.f32 %v5132_v37, %v2177_v13  ;;  %v4089_v49 = vpop.eup %4088  ;;  %4100 = vrcp.f32 %v2360_v31  ;;  %v2363_v1 = vadd.f32 1.0, %v4087_v0 }
 0x36e   : > { %v4091_v53 = vpop.eup %4090  ;;  %4102 = vpow2.f32 %v3317_v12  ;;  %v3320_v44 = vmul.f32 -1.442695, %v2183_v48  ;;  %v2459_v17 = vmul.f32 %v4089_v49, %v5145_v58 }
 0x36f   : > { %v3319_v57 = vmul.f32 -1.442695, %v2178_v23  ;;  %v2362_v29 = vadd.f32 1.0, %v4091_v53 }
 0x370   : > { %v3591_v34 = vpop.f32.mrb[22].mxu0  ;;  %2497 = vadd.xlane.f32.xlu1 %v2460_v63  ;;  %v4093_v56 = vpop.eup %4092 }
 0x371   : > { %v2193_v9 = vadd.f32 %v3591_v34, %v5132_v37  ;;  %v2187_v39 = vpop.f32.mrb[23].mxu0  ;;  %4104 = vpow2.f32 %v3319_v57  ;;  %v4095_v50 = vpop.eup %4094  ;;  %v2461_v41 = vmul.f32 %v4093_v56, %v5145_v58 }
 0x372   : > { %v2188_v2 = vadd.f32 %v5132_v37, %v2187_v39  ;;  %4106 = vrcp.f32 %v2363_v1  ;;  %v4097_v27 = vpop.eup %4096  ;;  %v2365_v18 = vadd.f32 1.0, %v4095_v50 }
 0x373   : > { %v3322_v59 = vmul.f32 -1.442695, %v2193_v9  ;;  %4108 = vpow2.f32 %v3320_v44  ;;  %v2364_v46 = vadd.f32 1.0, %v4097_v27 }
 0x374   : > { %v3594_v6 = vpop.f32.mrb[24].mxu0  ;;  %2495 = vadd.xlane.f32.xlu1 %v2459_v17  ;;  %v3321_v16 = vmul.f32 -1.442695, %v2188_v2 }
 0x375   : > { %v2203_v61 = vadd.f32 %v3594_v6, %v5132_v37  ;;  %v2197_v62 = vpop.f32.mrb[25].mxu0  ;;  %4110 = vpow2.f32 %v3322_v59 }
 0x376   : > { %v2198_v19 = vadd.f32 %v5132_v37, %v2197_v62  ;;  %v4099_v10 = vpop.eup %4098  ;;  %4112 = vrcp.f32 %v2362_v29 }
 0x377   : > { %v3324_v26 = vmul.f32 -1.442695, %v2203_v61  ;;  %4114 = vpow2.f32 %v3310_v35  ;;  %v2464_v30 = vmul.f32 %v4099_v10, %v5145_v58  ;;  %v4101_v60 = vpop.eup %4100 }
 0x378   : > { %v3323_v15 = vmul.f32 -1.442695, %v2198_v19  ;;  %v3597_v45 = vpop.f32.mrb[26].mxu0  ;;  %2499 = vadd.xlane.f32.xlu1 %v2461_v41  ;;  %4116 = vpow2.f32 %v3321_v16  ;;  %v4103_v21 = vpop.eup %4102  ;;  %v2463_v38 = vmul.f32 %v4101_v60, %v5145_v58 }
 0x379   : > { %v2207_v20 = vpop.f32.mrb[27].mxu0  ;;  %4118 = vpow2.f32 %v3324_v26  ;;  %2505 = vadd.xlane.f32.xlu0 %v2464_v30  ;;  %v2366_v3 = vadd.f32 1.0, %v4103_v21  ;;  %v2213_v22 = vadd.f32 %v3597_v45, %v5132_v37 }
 0x37a   : > { %v2208_v47 = vadd.f32 %v5132_v37, %v2207_v20  ;;  %4120 = vrcp.f32 %v2365_v18 }
 0x37b   : > { %v4105_v7 = vpop.eup %4104  ;;  %4122 = vpow2.f32 %v3323_v15  ;;  %v3326_v6 = vmul.f32 -1.442695, %v2213_v22 }
 0x37c   : > { %v3325_v25 = vmul.f32 -1.442695, %v2208_v47  ;;  %v3600_v4 = vpop.f32.mrb[28].mxu0  ;;  %v4107_v52 = vpop.eup %4106  ;;  %4124 = vpow2.f32 %v3318_v33  ;;  %v2368_v11 = vadd.f32 1.0, %v4105_v7 }
 0x37d   : > { %v2223_v24 = vadd.f32 %v3600_v4, %v5132_v37  ;;  %v2217_v42 = vpop.f32.mrb[29].mxu0  ;;  %4126 = vrcp.f32 %v2364_v46  ;;  %2503 = vadd.xlane.f32.xlu0 %v2463_v38  ;;  %v4109_v8 = vpop.eup %4108  ;;  %v2466_v32 = vmul.f32 %v4107_v52, %v5145_v58 }
 0x37e   : > { %v2218_v5 = vadd.f32 %v5132_v37, %v2217_v42  ;;  %4128 = vrcp.f32 %v2368_v11  ;;  %v2369_v49 = vadd.f32 1.0, %v4109_v8 }
 0x37f   : > { %v3328_v36 = vmul.f32 -1.442695, %v2223_v24  ;;  %v4111_v40 = vpop.eup %4110  ;;  %4130 = vpow2.f32 %v3325_v25 }
 0x380   : > { %v3327_v43 = vmul.f32 -1.442695, %v2218_v5  ;;  %v3603_v55 = vpop.f32.mrb[30].mxu0  ;;  %v4113_v0 = vpop.eup %4112  ;;  %v2371_v31 = vadd.f32 1.0, %v4111_v40 }
 0x381   : > { %4132 = vpow2.f32 %v3328_v36  ;;  %v2233_v13 = vadd.f32 %v3603_v55, %v5132_v37  ;;  %v2227_v12 = vpop.f32.mrb[31].mxu0  ;;  %v5178_v48 = vpop.eup %4114  ;;  %2509 = vadd.xlane.f32.xlu0 %v2466_v32  ;;  %v2465_v34 = vmul.f32 %v4113_v0, %v5145_v58 }
 0x382   : > { %4134 = vrcp.f32 %v2366_v3  ;;  %v2228_v23 = vadd.f32 %v5132_v37, %v2227_v12  ;;  %v4117_v63 = vpop.eup %4116  ;;  %v2359_v55 = vadd.f32 1.0, %v5178_v48 }
 0x383   : > { %4136 = vrcp.f32 %v2371_v31  ;;  %v3330_v1 = vmul.f32 -1.442695, %v2233_v13  ;;  %v4119_v57 = vpop.eup %4118  ;;  %v2370_v53 = vadd.f32 1.0, %v4117_v63 }
 0x384   : > { %4138 = vpow2.f32 %v3327_v43  ;;  %v4121_v44 = vpop.eup %4120  ;;  %v2373_v9 = vadd.f32 1.0, %v4119_v57  ;;  %v3329_v39 = vmul.f32 -1.442695, %v2228_v23 }
 0x385   : > { %4140 = vpow2.f32 %v3330_v1  ;;  %v3606_v2 = vpop.f32.mrb[32].mxu0  ;;  %v4123_v17 = vpop.eup %4122  ;;  %2507 = vadd.xlane.f32.xlu0 %v2465_v34  ;;  %v2468_v16 = vmul.f32 %v4121_v44, %v5145_v58 }
 0x386   : > { %4142 = vrcp.f32 %v2370_v53  ;;  %v2243_v56 = vadd.f32 %v3606_v2, %v5132_v37  ;;  %v2237_v29 = vpop.f32.mrb[33].mxu0  ;;  %v4125_v59 = vpop.eup %4124  ;;  %v2372_v62 = vadd.f32 1.0, %v4123_v17 }
 0x387   : > { %4144 = vrcp.f32 %v2369_v49  ;;  %v2238_v50 = vadd.f32 %v5132_v37, %v2237_v29  ;;  %v4127_v35 = vpop.eup %4126  ;;  %v2367_v30 = vadd.f32 1.0, %v4125_v59 }
 0x388   : > { %4146 = vrcp.f32 %v2373_v9  ;;  %v3332_v28 = vmul.f32 -1.442695, %v2243_v56  ;;  %v4129_v61 = vpop.eup %4128  ;;  %v2467_v33 = vmul.f32 %v4127_v35, %v5145_v58 }
 0x389   : > { %4148 = vpow2.f32 %v3329_v39  ;;  %v3609_v27 = vpop.f32.mrb[34].mxu0  ;;  %v4131_v19 = vpop.eup %4130  ;;  %2513 = vadd.xlane.f32.xlu0 %v2468_v16  ;;  %v2471_v10 = vmul.f32 %v4129_v61, %v5145_v58  ;;  %v3331_v26 = vmul.f32 -1.442695, %v2238_v50 }
 0x38a   : > { %v2247_v41 = vpop.f32.mrb[35].mxu0  ;;  %4150 = vpow2.f32 %v3332_v28  ;;  %v2374_v46 = vadd.f32 1.0, %v4131_v19  ;;  %v2253_v25 = vadd.f32 %v3609_v27, %v5132_v37 }
 0x38b   : > { %v4133_v18 = vpop.eup %4132  ;;  %v2248_v15 = vadd.f32 %v5132_v37, %v2247_v41  ;;  %4152 = vpow2.f32 %v3326_v6  ;;  %2519 = vadd.xlane.f32.xlu1 %v2471_v10 }
 0x38c   : > { %v4135_v45 = vpop.eup %4134  ;;  %v2377_v60 = vadd.f32 1.0, %v4133_v18  ;;  %4154 = vrcp.f32 %v2372_v62  ;;  %v3334_v36 = vmul.f32 -1.442695, %v2253_v25 }
 0x38d   : > { %v4137_v20 = vpop.eup %4136  ;;  %2511 = vadd.xlane.f32.xlu0 %v2467_v33  ;;  %v3333_v4 = vmul.f32 -1.442695, %v2248_v15  ;;  %v2469_v11 = vmul.f32 %v4135_v45, %v5145_v58 }
 0x38e   : > { %v4139_v47 = vpop.eup %4138  ;;  %4156 = vrcp.f32 %v2377_v60  ;;  %v2474_v21 = vmul.f32 %v4137_v20, %v5145_v58 }
 0x38f   : > { %v4141_v7 = vpop.eup %4140  ;;  %4158 = vpow2.f32 %v3331_v26  ;;  %v2376_v42 = vadd.f32 1.0, %v4139_v47 }
 0x390   : > { %v4143_v38 = vpop.eup %4142  ;;  %4160 = vrcp.f32 %v2367_v30  ;;  %v2379_v52 = vadd.f32 1.0, %v4141_v7  ;;  %2525 = vadd.xlane.f32.xlu1 %v2474_v21 }
 0x391   : > { %v4145_v24 = vpop.eup %4144  ;;  %4162 = vrcp.f32 %v2374_v46  ;;  %2515 = vadd.xlane.f32.xlu0 %v2469_v11  ;;  %v2473_v5 = vmul.f32 %v4143_v38, %v5145_v58 }
 0x392   : > { %v4147_v3 = vpop.eup %4146  ;;  %4164 = vpow2.f32 %v3333_v4  ;;  %v2472_v37 = vmul.f32 %v4145_v24, %v5145_v58 }
 0x393   : > { %v4149_v8 = vpop.eup %4148  ;;  %4166 = vrcp.f32 %v2379_v52  ;;  %v2476_v0 = vmul.f32 %v4147_v3, %v5145_v58 }
 0x394   : > { %v2378_v40 = vadd.f32 1.0, %v4149_v8  ;;  %2523 = vadd.xlane.f32.xlu1 %v2473_v5  ;;  %v4151_v43 = vpop.eup %4150  ;;  %4168 = vrcp.f32 %v2376_v42  ;;  %v5216_v42 = vstv %s2551_s16 }
 0x395   : > { %v4153_v32 = vpop.eup %4152  ;;  %2521 = vadd.xlane.f32.xlu0 %v2472_v37  ;;  %4170 = vpow2.f32 %v3334_v36  ;;  %v2381_v12 = vadd.f32 1.0, %v4151_v43 }
 0x396   : > { %v4155_v31 = vpop.eup %4154  ;;  %4172 = vrcp.f32 %v2378_v40  ;;  %v2375_v63 = vadd.f32 1.0, %v4153_v32 }
 0x397   : > { %4174 = vrcp.f32 %v2359_v55  ;;  %v2475_v57 = vmul.f32 %v4155_v31, %v5145_v58 }
 0x398   : > { %v4157_v13 = vpop.eup %4156  ;;  %2529 = vadd.xlane.f32.xlu1 %v2476_v0  ;;  %4176 = vrcp.f32 %v2381_v12 }
 0x399   : > { %v4159_v23 = vpop.eup %4158  ;;  %v2480_v49 = vmul.f32 %v4157_v13, %v5145_v58  ;;  %4178 = vrcp.f32 %v2375_v63 }
 0x39a   : > { %v4161_v1 = vpop.eup %4160  ;;  %v2380_v53 = vadd.f32 1.0, %v4159_v23 }
 0x39b   : > { %v4163_v48 = vpop.eup %4162  ;;  %2537 = vadd.xlane.f32.xlu0 %v2480_v49  ;;  %v2470_v34 = vmul.f32 %v4161_v1, %v5145_v58 }
 0x39c   : > { %2527 = vadd.xlane.f32.xlu1 %v2475_v57  ;;  %v4165_v22 = vpop.eup %4164  ;;  %v2477_v9 = vmul.f32 %v4163_v48, %v5145_v58  ;;  %4180 = vrcp.f32 %v2380_v53 }
 0x39d   : > { %v4167_v44 = vpop.eup %4166  ;;  %v2382_v2 = vadd.f32 1.0, %v4165_v22 }
 0x39e   : > { %v4169_v39 = vpop.eup %4168  ;;  %v2482_v56 = vmul.f32 %v4167_v44, %v5145_v58 }
 0x39f   : > { %2517 = vadd.xlane.f32.xlu0 %v2470_v34  ;;  %v4171_v17 = vpop.eup %4170  ;;  %v2479_v59 = vmul.f32 %v4169_v39, %v5145_v58  ;;  %4182 = vrcp.f32 %v2382_v2 }
 0x3a0   : > { %2531 = vadd.xlane.f32.xlu1 %v2477_v9  ;;  %v4173_v29 = vpop.eup %4172  ;;  %v2383_v35 = vadd.f32 1.0, %v4171_v17 }
 0x3a1   : > { %v4175_v50 = vpop.eup %4174  ;;  %v2481_v6 = vmul.f32 %v4173_v29, %v5145_v58  ;;  %v2586_v29 = vld [vmem:[%s5244_s21 + $0x8] sm:$0xff] }
 0x3a2   : > { %v4177_v28 = vpop.eup %4176  ;;  %v2462_v16 = vmul.f32 %v4175_v50, %v5145_v58  ;;  %4184 = vrcp.f32 %v2383_v35  ;;  %vm2590_vm14 = vcmp.ne.s32.totalorder %v2586_v29, 0 }
 0x3a3   : > { %2541 = vadd.xlane.f32.xlu0 %v2482_v56  ;;  %v4179_v61 = vpop.eup %4178  ;;  %v2484_v62 = vmul.f32 %v4177_v28, %v5145_v58 }
 0x3a4   : > { %2535 = vadd.xlane.f32.xlu1 %v2479_v59  ;;  %v2478_v19 = vmul.f32 %v4179_v61, %v5145_v58 }
 0x3a6   : > { %v4181_v27 = vpop.eup %4180 }
 0x3a7   : > { %2539 = vadd.xlane.f32.xlu0 %v2481_v6  ;;  %v2483_v41 = vmul.f32 %v4181_v27, %v5145_v58 }
 0x3a8   : > { %2501 = vadd.xlane.f32.xlu1 %v2462_v16 }
 0x3a9   : > { %v4183_v10 = vpop.eup %4182 }
 0x3aa   : > { %v2485_v18 = vmul.f32 %v4183_v10, %v5145_v58 }
 0x3ab   : > { %2545 = vadd.xlane.f32.xlu0 %v2484_v62 }
 0x3ac   : > { %2533 = vadd.xlane.f32.xlu1 %v2478_v19  ;;  %v4185_v26 = vpop.eup %4184 }
 0x3ad   : > { %v2486_v15 = vmul.f32 %v4185_v26, %v5145_v58  ;;  %v2626_v58 = vand.u32 127, %v669_v51 }
 0x3af   : > { %2543 = vadd.xlane.f32.xlu0 %v2483_v41  ;;  %v5221_v36 = vsub.s32 %v2626_v58, %v4470_v54 }
 0x3b3   : > { %2547 = vadd.xlane.f32.xlu0 %v2485_v18 }
 0x3b7   : > { %2549 = vadd.xlane.f32.xlu0 %v2486_v15 }
 0x3e6   : > { %v2490_v45 = vpop.xlane.xlu1 %2489 }
 0x3e7   : > { %v2488_v60 = vpop.xlane.xlu0 %2487  ;;  %v2554_v12 = vadd.f32 %v5216_v42, %v2490_v45 }
 0x3e8   : > { %v2553_v23 = vadd.f32 %v5216_v42, %v2488_v60 }
 0x3e9   : > { %v2634_v39 = vrot.slane %v2554_v12, %v5221_v36 }
 0x3ea   : > { %v2630_v2 = vrot.slane %v2553_v23, %v5221_v36 }
 0x3ec   : > { %v2756_v41 = vsel %vm2755_vm8, %v2634_v39, %v2630_v2 }
 0x3f5   : > { %v2494_v30 = vpop.xlane.xlu1 %2493 }
 0x3f6   : > { %v2556_v16 = vadd.f32 %v5216_v42, %v2494_v30 }
 0x3f9   : > { %v2492_v33 = vpop.xlane.xlu1 %2491 }
 0x3fa   : > { %v2555_v63 = vadd.f32 %v5216_v42, %v2492_v33 }
 0x3fc   : > { %v2638_v17 = vrot.slane %v2555_v63, %v5221_v36 }
 0x3fd   : > { %v5209_v46 = vpop.xlane.xlu1 %2497 }
 0x3fe   : > { %v2758_v15 = vsel %vm2757_vm9, %v2638_v17, %v2756_v41 }
 0x401   : > { %v2496_v21 = vpop.xlane.xlu1 %2495 }
 0x402   : > { %v2557_v59 = vadd.f32 %v5216_v42, %v2496_v21 }
 0x404   : > { %v2646_v45 = vrot.slane %v2557_v59, %v5221_v36 }
 0x405   : > { %v5211_v4 = vpop.xlane.xlu1 %2499 }
 0x406   : > { %v2506_v20 = vpop.xlane.xlu0 %2505 }
 0x407   : > { %v2562_v40 = vadd.f32 %v5216_v42, %v2506_v20  ;;  %v2642_v20 = vrot.slane %v2556_v16, %v5221_v36 }
 0x409   : > { %v2666_v0 = vrot.slane %v2562_v40, %v5221_v36 }
 0x40a   : > { %v2504_v47 = vpop.xlane.xlu0 %2503 }
 0x40b   : > { %v2561_v3 = vadd.f32 %v5216_v42, %v2504_v47  ;;  %v2559_v47 = vadd.f32 %v5216_v42, %v5211_v4 }
 0x40d   : > { %v2662_v43 = vrot.slane %v2561_v3, %v5221_v36  ;;  %v2760_v3 = vsel %vm2759_vm10, %v2642_v20, %v2758_v15 }
 0x40e   : > { %v2510_v7 = vpop.xlane.xlu0 %2509 }
 0x40f   : > { %v2564_v31 = vadd.f32 %v5216_v42, %v2510_v7  ;;  %v2769_v49 = vsel %vm2755_vm8, %v2666_v0, %v2662_v43 }
 0x411   : > { %v2674_v22 = vrot.slane %v2564_v31, %v5221_v36 }
 0x412   : > { %v2508_v25 = vpop.xlane.xlu0 %2507 }
 0x413   : > { %v2563_v8 = vadd.f32 %v5216_v42, %v2508_v25 }
 0x415   : > { %v2670_v51 = vrot.slane %v2563_v8, %v5221_v36  ;;  %v2762_v8 = vsel %vm2761_vm11, %v2646_v45, %v2760_v3 }
 0x416   : > { %v2514_v38 = vpop.xlane.xlu0 %2513 }
 0x417   : > { %v2770_v1 = vsel %vm2757_vm9, %v2670_v51, %v2769_v49  ;;  %v2566_v34 = vadd.f32 %v5216_v42, %v2514_v38  ;;  %v2558_v38 = vadd.f32 %v5216_v42, %v5209_v46  ;;  %v2585_v46 = vld [vmem:[%s5244_s21] sm:$0xff] }
 0x418   : > { %v2520_v52 = vpop.xlane.xlu1 %2519  ;;  %v2771_v56 = vsel %vm2759_vm10, %v2674_v22, %v2770_v1  ;;  %vm2589_vm1 = vcmp.ne.s32.totalorder %v2585_v46, 0  ;;  %v2587_v22 = vld [vmem:[%s5244_s21 + $0x10] sm:$0xff] }
 0x419   : > { %v2569_v50 = vadd.f32 %v5216_v42, %v2520_v52  ;;  %v2682_v61 = vrot.slane %v2566_v34, %v5221_v36  ;;  %vm2591_vm2 = vcmp.ne.s32.totalorder %v2587_v22, 0 }
 0x41a   : > { %v2512_v11 = vpop.xlane.xlu0 %2511 }
 0x41b   : > { %v2565_v32 = vadd.f32 %v5216_v42, %v2512_v11  ;;  %v2694_v30 = vrot.slane %v2569_v50, %v5221_v36 }
 0x41d   : > { %v5214_v24 = vpop.xlane.xlu1 %2525  ;;  %v2678_v57 = vrot.slane %v2565_v32, %v5221_v36  ;;  %v2650_v32 = vrot.slane %v2558_v38, %v5221_v36 }
 0x41e   : > { %v2516_v5 = vpop.xlane.xlu0 %2515  ;;  %v2572_v52 = vadd.f32 %v5216_v42, %v5214_v24 }
 0x41f   : > { %v2567_v48 = vadd.f32 %v5216_v42, %v2516_v5  ;;  %v2772_v35 = vsel %vm2761_vm11, %v2678_v57, %v2771_v56 }
 0x420   : > { %v2773_v26 = vsel %vm2763_vm12, %v2682_v61, %v2772_v35  ;;  %v2706_v0 = vrot.slane %v2572_v52, %v5221_v36 }
 0x421   : > { %v2524_v37 = vpop.xlane.xlu1 %2523  ;;  %v2686_v6 = vrot.slane %v2567_v48, %v5221_v36  ;;  %v2764_v48 = vsel %vm2763_vm12, %v2650_v32, %v2762_v8 }
 0x422   : > { %v2522_v55 = vpop.xlane.xlu0 %2521  ;;  %v2571_v10 = vadd.f32 %v5216_v42, %v2524_v37  ;;  %v2654_v37 = vrot.slane %v2559_v47, %v5221_v36 }
 0x423   : > { %v2570_v9 = vadd.f32 %v5216_v42, %v2522_v55  ;;  %v2774_v33 = vsel %vm2765_vm13, %v2686_v6, %v2773_v26 }
 0x424   : > { %v2702_v4 = vrot.slane %v2571_v10, %v5221_v36  ;;  %v2766_v39 = vsel %vm2765_vm13, %v2654_v37, %v2764_v48 }
 0x425   : > { %v5229_v13 = vpop.xlane.xlu1 %2529  ;;  %v2698_v19 = vrot.slane %v2570_v9, %v5221_v36 }
 0x426   : > { %v2574_v31 = vadd.f32 %v5216_v42, %v5229_v13 }
 0x427   : > { %v2776_v11 = vsel %vm2755_vm8, %v2698_v19, %v2694_v30 }
 0x428   : > { %v5238_v53 = vpop.xlane.xlu0 %2537  ;;  %v2777_v24 = vsel %vm2757_vm9, %v2702_v4, %v2776_v11  ;;  %v2714_v2 = vrot.slane %v2574_v31, %v5221_v36 }
 0x429   : > { %v2528_v44 = vpop.xlane.xlu1 %2527  ;;  %v2778_v63 = vsel %vm2759_vm10, %v2706_v0, %v2777_v24  ;;  %v2578_v34 = vadd.f32 %v5216_v42, %v5238_v53 }
 0x42a   : > { %v2573_v21 = vadd.f32 %v5216_v42, %v2528_v44 }
 0x42b   : > { %v2730_v16 = vrot.slane %v2578_v34, %v5221_v36 }
 0x42c   : > { %v2518_v28 = vpop.xlane.xlu0 %2517  ;;  %v2710_v43 = vrot.slane %v2573_v21, %v5221_v36 }
 0x42d   : > { %v2568_v62 = vadd.f32 %v5216_v42, %v2518_v28  ;;  %v2532_v27 = vpop.xlane.xlu1 %2531 }
 0x42e   : > { %v2575_v55 = vadd.f32 %v5216_v42, %v2532_v27  ;;  %v2779_v13 = vsel %vm2761_vm11, %v2710_v43, %v2778_v63 }
 0x42f   : > { %v2690_v18 = vrot.slane %v2568_v62, %v5221_v36  ;;  %v2780_v28 = vsel %vm2763_vm12, %v2714_v2, %v2779_v13 }
 0x430   : > { %v2542_v60 = vpop.xlane.xlu0 %2541  ;;  %v2718_v44 = vrot.slane %v2575_v55, %v5221_v36 }
 0x431   : > { %v2536_v7 = vpop.xlane.xlu1 %2535  ;;  %v2775_v25 = vsel %vm2767_vm15, %v2690_v18, %v2774_v33  ;;  %v2580_v61 = vadd.f32 %v5216_v42, %v2542_v60 }
 0x432   : > { %v5281_v58 = vsel %vm2590_vm14, %v2775_v25, -4.2949673e+09  ;;  %v2577_v23 = vadd.f32 %v5216_v42, %v2536_v7  ;;  %v2781_v27 = vsel %vm2765_vm13, %v2718_v44, %v2780_v28  ;;  %v2588_v25 = vld [vmem:[%s5244_s21 + $0x18] sm:$0xff]  ;;  %v2863_v28 = vsub.s32 2, %v4470_v54 }
 0x433   : > { %v2802_v5 = vsel %vm2798_vm0, %v5281_v58, -inf  ;;  %v2738_v30 = vrot.slane %v2580_v61, %v5221_v36  ;;  %vm2592_vm3 = vcmp.ne.s32.totalorder %v2588_v25, 0 }
 0x434   : > { %2803 = vmax.xlane.f32.xlu0 %v2802_v5  ;;  %v2540_v40 = vpop.xlane.xlu0 %2539  ;;  %v2726_v29 = vrot.slane %v2577_v23, %v5221_v36 }
 0x435   : > { %v2502_v51 = vpop.xlane.xlu1 %2501  ;;  %v2579_v49 = vadd.f32 %v5216_v42, %v2540_v40 }
 0x436   : > { %v2560_v12 = vadd.f32 %v5216_v42, %v2502_v51  ;;  %v2783_v41 = vsel %vm2755_vm8, %v2730_v16, %v2726_v29 }
 0x437   : > { %v2734_v53 = vrot.slane %v2579_v49, %v5221_v36 }
 0x438   : > { %v2658_v1 = vrot.slane %v2560_v12, %v5221_v36  ;;  %v2546_v57 = vpop.xlane.xlu0 %2545 }
 0x439   : > { %v2534_v9 = vpop.xlane.xlu1 %2533  ;;  %v2784_v18 = vsel %vm2757_vm9, %v2734_v53, %v2783_v41  ;;  %v2582_v60 = vadd.f32 %v5216_v42, %v2546_v57 }
 0x43a   : > { %v2576_v17 = vadd.f32 %v5216_v42, %v2534_v9  ;;  %v2768_v56 = vsel %vm2767_vm15, %v2658_v1, %v2766_v39  ;;  %v2785_v20 = vsel %vm2759_vm10, %v2738_v30, %v2784_v18  ;;  %v2898_v30 = vsub.s32 7, %v4470_v54 }
 0x43b   : > { %v2794_v59 = vsel %vm2589_vm1, %v2768_v56, -4.2949673e+09  ;;  %v2746_v38 = vrot.slane %v2582_v60, %v5221_v36 }
 0x43c   : > { %v2722_v50 = vrot.slane %v2576_v17, %v5221_v36  ;;  %v2544_v35 = vpop.xlane.xlu0 %2543  ;;  %v2799_v6 = vsel %vm2798_vm0, %v2794_v59, -inf  ;;  %v5353_v17 = vsub.s32 1, %v4470_v54 }
 0x43d   : > { %v2581_v62 = vadd.f32 %v5216_v42, %v2544_v35  ;;  %2800 = vmax.xlane.f32.xlu1 %v2799_v6  ;;  %v2877_v6 = vsub.s32 4, %v4470_v54 }
 0x43e   : > { %v2782_v19 = vsel %vm2767_vm15, %v2722_v50, %v2781_v27  ;;  %v2870_v27 = vsub.s32 3, %v4470_v54 }
 0x43f   : > { %v2796_v10 = vsel %vm2591_vm2, %v2782_v19, -4.2949673e+09  ;;  %v2742_v26 = vrot.slane %v2581_v62, %v5221_v36  ;;  %v2891_v62 = vsub.s32 6, %v4470_v54 }
 0x440   : > { %v2548_v15 = vpop.xlane.xlu0 %2547  ;;  %v2805_v45 = vsel %vm2798_vm0, %v2796_v10, -inf }
 0x441   : > { %v2583_v33 = vadd.f32 %v5216_v42, %v2548_v15  ;;  %2806 = vmax.xlane.f32.xlu1 %v2805_v45  ;;  %v2786_v47 = vsel %vm2761_vm11, %v2742_v26, %v2785_v20 }
 0x442   : > { %v2787_v3 = vsel %vm2763_vm12, %v2746_v38, %v2786_v47 }
 0x443   : > { %v2750_v21 = vrot.slane %v2583_v33, %v5221_v36 }
 0x444   : > { %v2550_v7 = vpop.xlane.xlu0 %2549 }
 0x445   : > { %v2584_v52 = vadd.f32 %v5216_v42, %v2550_v7  ;;  %v2788_v4 = vsel %vm2765_vm13, %v2750_v21, %v2787_v3 }
 0x447   : > { %v2754_v11 = vrot.slane %v2584_v52, %v5221_v36 }
 0x449   : > { %v2789_v5 = vsel %vm2767_vm15, %v2754_v11, %v2788_v4 }
 0x44a   : > { %v2797_v8 = vsel %vm2592_vm3, %v2789_v5, -4.2949673e+09 }
 0x44b   : > { %v2808_v40 = vsel %vm2798_vm0, %v2797_v8, -inf }
 0x44c   : > { %2809 = vmax.xlane.f32.xlu0 %v2808_v40 }
 0x4c1   : > { %v2804_v46 = vpop.xlane.xlu0 %2803 }
 0x4c2   : > { %v2812_v37 = vsub.f32 %v5281_v58, %v2804_v46 }
 0x4c4   : > { %v2817_v24 = vmul.f32 1.442695, %v2812_v37 }
 0x4c6   : > { %4186 = vpow2.f32 %v2817_v24 }
 0x4ca   : > { %v2801_v43 = vpop.xlane.xlu1 %2800 }
 0x4cb   : > { %v2811_v42 = vsub.f32 %v2794_v59, %v2801_v43 }
 0x4cd   : > { %v2815_v55 = vmul.f32 1.442695, %v2811_v42 }
 0x4ce   : > { %v2807_v36 = vpop.xlane.xlu1 %2806 }
 0x4cf   : > { %4188 = vpow2.f32 %v2815_v55  ;;  %v2813_v51 = vsub.f32 %v2796_v10, %v2807_v36  ;;  %v2884_v10 = vsub.s32 5, %v4470_v54 }
 0x4d0   : > { %v4187_v32 = vpop.eup %4186 }
 0x4d1   : > { %v2819_v0 = vmul.f32 1.442695, %v2813_v51  ;;  %v2826_v31 = vsel %vm2798_vm0, %v4187_v32, 0.0 }
 0x4d2   : > { %2827 = vadd.xlane.f32.xlu0 %v2826_v31 }
 0x4d3   : > { %4190 = vpow2.f32 %v2819_v0  ;;  %v4202_v0 = vld [vmem:[%s4351_s25 + $0x8] sm:$0xff] }
 0x4d9   : > { %v4189_v12 = vpop.eup %4188  ;;  %v2810_v23 = vpop.xlane.xlu0 %2809 }
 0x4da   : > { %v2814_v63 = vsub.f32 %v2797_v8, %v2810_v23  ;;  %v2823_v49 = vsel %vm2798_vm0, %v4189_v12, 0.0 }
 0x4db   : > { %2824 = vadd.xlane.f32.xlu1 %v2823_v49 }
 0x4dc   : > { %v2821_v58 = vmul.f32 1.442695, %v2814_v63 }
 0x4dd   : > { %v4191_v1 = vpop.eup %4190 }
 0x4de   : > { %4192 = vpow2.f32 %v2821_v58  ;;  %v2829_v57 = vsel %vm2798_vm0, %v4191_v1, 0.0  ;;  %v4204_v58 = vld [vmem:[%s4351_s25 + $0x20] sm:$0xff] }
 0x4df   : > { %2830 = vadd.xlane.f32.xlu1 %v2829_v57  ;;  %v4205_v57 = vld [vmem:[%s4351_s25 + $0x10] sm:$0xff] }
 0x4e8   : > { %v4193_v48 = vpop.eup %4192 }
 0x4e9   : > { %v2832_v22 = vsel %vm2798_vm0, %v4193_v48, 0.0 }
 0x4ea   : > { %2833 = vadd.xlane.f32.xlu0 %v2832_v22 }
 0x55f   : > { %v2828_v34 = vpop.xlane.xlu0 %2827 }
 0x560   : > { %4194 = vrcp.f32 %v2828_v34 }
 0x568   : > { %v2825_v13 = vpop.xlane.xlu1 %2824 }
 0x569   : > { %4196 = vrcp.f32 %v2825_v13  ;;  %v4206_v13 = vld [vmem:[%s4351_s25 + $0x30] sm:$0xff] }
 0x56a   : > { %v4195_v9 = vpop.eup %4194 }
 0x56b   : > { %v2838_v56 = vmul.f32 %v4195_v9, %v4187_v32  ;;  %v4207_v9 = vld [vmem:[%s4351_s25 + $0x18] sm:$0xff] }
 0x56c   : > { %v2831_v44 = vpop.xlane.xlu1 %2830 }
 0x56d   : > { %4198 = vrcp.f32 %v2831_v44  ;;  %2844 = vst.msk [vmem:[%s5350_s27 + $0x8] sm:$0xff] %vm2798_vm0, %v2838_v56  ;;  %v2906_v26 = vrot.slane %v2838_v56, %v4487_v14  ;;  %v2920_v60 = vrot.slane %v2838_v56, %v2863_v28  ;;  %v2934_v20 = vrot.slane %v2838_v56, %v2877_v6 }
 0x56e   : > { %v2913_v47 = vrot.slane %v2838_v56, %v5353_v17  ;;  %v2948_v21 = vrot.slane %v2838_v56, %v2891_v62  ;;  %v2927_v7 = vrot.slane %v2838_v56, %v2870_v27  ;;  %v2941_v25 = vrot.slane %v2838_v56, %v2884_v10 }
 0x56f   : > { %v2955_v54 = vrot.slane %v2838_v56, %v2898_v30  ;;  %v4208_v56 = vld [vmem:[%s4351_s25 + $0x40] sm:$0xff] }
 0x573   : > { %v4197_v39 = vpop.eup %4196 }
 0x574   : > { %v2836_v2 = vmul.f32 %v4197_v39, %v4189_v12  ;;  %v4203_v12 = vld [vmem:[%s4351_s25] sm:$0xff] }
 0x576   : > { %2843 = vst.msk [vmem:[%s5350_s27] sm:$0xff] %vm2798_vm0, %v2836_v2  ;;  %v2857_v29 = vrot.slane %v2836_v2, %v5353_v17  ;;  %v2850_v59 = vrot.slane %v2836_v2, %v4487_v14  ;;  %v2878_v16 = vrot.slane %v2836_v2, %v2877_v6  ;;  %v2864_v61 = vrot.slane %v2836_v2, %v2863_v28 }
 0x577   : > { %v4199_v53 = vpop.eup %4198  ;;  %v2834_v50 = vpop.xlane.xlu0 %2833  ;;  %v2892_v19 = vrot.slane %v2836_v2, %v2891_v62  ;;  %v2871_v41 = vrot.slane %v2836_v2, %v2870_v27  ;;  %v2885_v15 = vrot.slane %v2836_v2, %v2884_v10  ;;  %v2899_v33 = vrot.slane %v2836_v2, %v2898_v30 }
 0x578   : > { %v2840_v35 = vmul.f32 %v4199_v53, %v4191_v1  ;;  %4200 = vrcp.f32 %v2834_v50  ;;  %2859 = vbcast.lane.b32.xlu0 %v2857_v29, 256  ;;  %2852 = vbcast.lane.b32.xlu1 %v2850_v59, 256  ;;  %v4209_v59 = vld [vmem:[%s4351_s25 + $0x28] sm:$0xff] }
 0x57a   : > { %2845 = vst.msk [vmem:[%s5350_s27 + $0x10] sm:$0xff] %vm2798_vm0, %v2840_v35  ;;  %v2962_v38 = vrot.slane %v2840_v35, %v4487_v14  ;;  %v2976_v52 = vrot.slane %v2840_v35, %v2863_v28  ;;  %v2969_v11 = vrot.slane %v2840_v35, %v5353_v17  ;;  %v2990_v3 = vrot.slane %v2840_v35, %v2877_v6 }
 0x57b   : > { %v2983_v4 = vrot.slane %v2840_v35, %v2870_v27  ;;  %v3004_v5 = vrot.slane %v2840_v35, %v2891_v62  ;;  %v2997_v8 = vrot.slane %v2840_v35, %v2884_v10  ;;  %v3011_v46 = vrot.slane %v2840_v35, %v2898_v30 }
 0x57c   : > { %2880 = vbcast.lane.b32.xlu0 %v2878_v16, 256  ;;  %2866 = vbcast.lane.b32.xlu1 %v2864_v61, 256  ;;  %v4211_v16 = vld [vmem:[%s4351_s25 + $0x38] sm:$0xff] }
 0x580   : > { %2894 = vbcast.lane.b32.xlu0 %v2892_v19, 256  ;;  %2873 = vbcast.lane.b32.xlu1 %v2871_v41, 256  ;;  %v4212_v19 = vld [vmem:[%s4351_s25 + $0x60] sm:$0xff] }
 0x582   : > { %v4201_v18 = vpop.eup %4200 }
 0x583   : > { %v2842_v45 = vmul.f32 %v4201_v18, %v4193_v48 }
 0x584   : > { %2908 = vbcast.lane.b32.xlu0 %v2906_v26, 256  ;;  %2887 = vbcast.lane.b32.xlu1 %v2885_v15, 256 }
 0x585   : > { %2846 = vst.msk [vmem:[%s5350_s27 + $0x18] sm:$0xff] %vm2798_vm0, %v2842_v45  ;;  %v3018_v40 = vrot.slane %v2842_v45, %v4487_v14  ;;  %v3032_v37 = vrot.slane %v2842_v45, %v2863_v28  ;;  %v3025_v24 = vrot.slane %v2842_v45, %v5353_v17  ;;  %v3046_v43 = vrot.slane %v2842_v45, %v2877_v6  ;;  %v4210_v6 = vld [vmem:[%s4351_s25 + $0x50] sm:$0xff] }
 0x586   : > { %v3039_v42 = vrot.slane %v2842_v45, %v2870_v27  ;;  %v3060_v55 = vrot.slane %v2842_v45, %v2891_v62  ;;  %v3053_v14 = vrot.slane %v2842_v45, %v2884_v10  ;;  %v3067_v36 = vrot.slane %v2842_v45, %v2898_v30  ;;  %v4213_v10 = vld [vmem:[%s4351_s25 + $0x48] sm:$0xff]  ;;  %v4214_v45 = vld [vmem:[%s4351_s25 + $0x70] sm:$0xff] }
 0x588   : > { %2922 = vbcast.lane.b32.xlu0 %v2920_v60, 256  ;;  %2901 = vbcast.lane.b32.xlu1 %v2899_v33, 256  ;;  %v4215_v60 = vld [vmem:[%s4351_s25 + $0x58] sm:$0xff] }
 0x58c   : > { %2936 = vbcast.lane.b32.xlu0 %v2934_v20, 256  ;;  %2915 = vbcast.lane.b32.xlu1 %v2913_v47, 256 }
 0x590   : > { %2950 = vbcast.lane.b32.xlu0 %v2948_v21, 256  ;;  %2929 = vbcast.lane.b32.xlu1 %v2927_v7, 256  ;;  %v4216_v21 = vld [vmem:[%s4351_s25 + $0x80] sm:$0xff] }
 0x594   : > { %2943 = vbcast.lane.b32.xlu1 %v2941_v25, 256  ;;  %2964 = vbcast.lane.b32.xlu0 %v2962_v38, 256  ;;  %v4217_v25 = vld [vmem:[%s4351_s25 + $0x68] sm:$0xff] }
 0x598   : > { %2957 = vbcast.lane.b32.xlu1 %v2955_v54, 256  ;;  %2978 = vbcast.lane.b32.xlu0 %v2976_v52, 256 }
 0x59c   : > { %2971 = vbcast.lane.b32.xlu1 %v2969_v11, 256  ;;  %2992 = vbcast.lane.b32.xlu0 %v2990_v3, 256  ;;  %v4218_v11 = vld [vmem:[%s4351_s25 + $0x90] sm:$0xff] }
 0x5a0   : > { %2985 = vbcast.lane.b32.xlu1 %v2983_v4, 256  ;;  %3006 = vbcast.lane.b32.xlu0 %v3004_v5, 256  ;;  %v4219_v4 = vld [vmem:[%s4351_s25 + $0x78] sm:$0xff] }
 0x5a4   : > { %2999 = vbcast.lane.b32.xlu1 %v2997_v8, 256  ;;  %3020 = vbcast.lane.b32.xlu0 %v3018_v40, 256 }
 0x5a8   : > { %3013 = vbcast.lane.b32.xlu1 %v3011_v46, 256  ;;  %3034 = vbcast.lane.b32.xlu0 %v3032_v37, 256  ;;  %v4220_v46 = vld [vmem:[%s4351_s25 + $0xa0] sm:$0xff] }
 0x5ac   : > { %3027 = vbcast.lane.b32.xlu1 %v3025_v24, 256  ;;  %3048 = vbcast.lane.b32.xlu0 %v3046_v43, 256  ;;  %v4221_v24 = vld [vmem:[%s4351_s25 + $0x88] sm:$0xff] }
 0x5b0   : > { %3041 = vbcast.lane.b32.xlu1 %v3039_v42, 256  ;;  %3062 = vbcast.lane.b32.xlu0 %v3060_v55, 256 }
 0x5b4   : > { %3055 = vbcast.lane.b32.xlu1 %v3053_v14, 256  ;;  %v4222_v14 = vld [vmem:[%s4351_s25 + $0xb0] sm:$0xff] }
 0x5b8   : > { %3069 = vbcast.lane.b32.xlu1 %v3067_v36, 256 }
 0x5ea   : > { %v2860_v51 = vpop.permute.xlu0 %2859  ;;  %v2853_v32 = vpop.permute.xlu1 %2852 }
 0x5eb   : > { %v3072_v31 = vmul.f32 %v4202_v0, %v2860_v51  ;;  %v3071_v23 = vmul.f32 %v4203_v12, %v2853_v32  ;;  %v4223_v51 = vld [vmem:[%s4351_s25 + $0x98] sm:$0xff]  ;;  %v4224_v12 = vld [vmem:[%s4351_s25 + $0xc0] sm:$0xff] }
 0x5ed   : > { %3104 = vst.msk [vmem:[%s5382_s26 + $0x8] sm:$0xff] %vm1469_vm5, %v3072_v31  ;;  %3103 = vst.msk [vmem:[%s5382_s26] sm:$0xff] %vm1469_vm5, %v3071_v23 }
 0x5ee   : > { %v2881_v63 = vpop.permute.xlu0 %2880  ;;  %v2867_v49 = vpop.permute.xlu1 %2866 }
 0x5ef   : > { %v3075_v1 = vmul.f32 %v4204_v58, %v2881_v63  ;;  %v3073_v48 = vmul.f32 %v4205_v57, %v2867_v49  ;;  %v4225_v63 = vld [vmem:[%s4351_s25 + $0xa8] sm:$0xff]  ;;  %v4226_v57 = vld [vmem:[%s4351_s25 + $0xd0] sm:$0xff] }
 0x5f1   : > { %3107 = vst.msk [vmem:[%s5382_s26 + $0x20] sm:$0xff] %vm1469_vm5, %v3075_v1  ;;  %3105 = vst.msk [vmem:[%s5382_s26 + $0x10] sm:$0xff] %vm1469_vm5, %v3073_v48 }
 0x5f2   : > { %v2895_v22 = vpop.permute.xlu0 %2894  ;;  %v2874_v34 = vpop.permute.xlu1 %2873 }
 0x5f3   : > { %v3077_v44 = vmul.f32 %v4206_v13, %v2895_v22  ;;  %v3074_v39 = vmul.f32 %v4207_v9, %v2874_v34  ;;  %v4227_v22 = vld [vmem:[%s4351_s25 + $0xb8] sm:$0xff]  ;;  %v4228_v9 = vld [vmem:[%s4351_s25 + $0xe0] sm:$0xff] }
 0x5f5   : > { %3109 = vst.msk [vmem:[%s5382_s26 + $0x30] sm:$0xff] %vm1469_vm5, %v3077_v44  ;;  %3106 = vst.msk [vmem:[%s5382_s26 + $0x18] sm:$0xff] %vm1469_vm5, %v3074_v39 }
 0x5f6   : > { %v2909_v2 = vpop.permute.xlu0 %2908  ;;  %v2888_v17 = vpop.permute.xlu1 %2887 }
 0x5f7   : > { %v3079_v29 = vmul.f32 %v4208_v56, %v2909_v2  ;;  %v3076_v53 = vmul.f32 %v4209_v59, %v2888_v17  ;;  %v4229_v2 = vld [vmem:[%s4351_s25 + $0xc8] sm:$0xff]  ;;  %v4230_v59 = vld [vmem:[%s4351_s25 + $0xf0] sm:$0xff] }
 0x5f9   : > { %3111 = vst.msk [vmem:[%s5382_s26 + $0x40] sm:$0xff] %vm1469_vm5, %v3079_v29  ;;  %3108 = vst.msk [vmem:[%s5382_s26 + $0x28] sm:$0xff] %vm1469_vm5, %v3076_v53 }
 0x5fa   : > { %v2923_v50 = vpop.permute.xlu0 %2922  ;;  %v2902_v35 = vpop.permute.xlu1 %2901 }
 0x5fb   : > { %v3081_v28 = vmul.f32 %v4210_v6, %v2923_v50  ;;  %v3078_v61 = vmul.f32 %v4211_v16, %v2902_v35  ;;  %v4231_v50 = vld [vmem:[%s4351_s25 + $0xd8] sm:$0xff] }
 0x5fd   : > { %3113 = vst.msk [vmem:[%s5382_s26 + $0x50] sm:$0xff] %vm1469_vm5, %v3081_v28  ;;  %3110 = vst.msk [vmem:[%s5382_s26 + $0x38] sm:$0xff] %vm1469_vm5, %v3078_v61  ;;  %v4232_v28 = vld [vmem:[%s4351_s25 + $0xe8] sm:$0xff] }
 0x5fe   : > { %v2937_v62 = vpop.permute.xlu0 %2936  ;;  %v2916_v27 = vpop.permute.xlu1 %2915 }
 0x5ff   : > { %v3083_v41 = vmul.f32 %v4212_v19, %v2937_v62  ;;  %v3080_v18 = vmul.f32 %v4213_v10, %v2916_v27  ;;  %v4233_v62 = vld [vmem:[%s4351_s25 + $0xf8] sm:$0xff] }
 0x601   : > { %3115 = vst.msk [vmem:[%s5382_s26 + $0x60] sm:$0xff] %vm1469_vm5, %v3083_v41  ;;  %3112 = vst.msk [vmem:[%s5382_s26 + $0x48] sm:$0xff] %vm1469_vm5, %v3080_v18 }
 0x602   : > { %v2951_v26 = vpop.permute.xlu0 %2950  ;;  %v2930_v15 = vpop.permute.xlu1 %2929 }
 0x603   : > { %v3085_v30 = vmul.f32 %v4214_v45, %v2951_v26  ;;  %v3082_v33 = vmul.f32 %v4215_v60, %v2930_v15 }
 0x605   : > { %3117 = vst.msk [vmem:[%s5382_s26 + $0x70] sm:$0xff] %vm1469_vm5, %v3085_v30  ;;  %3114 = vst.msk [vmem:[%s5382_s26 + $0x58] sm:$0xff] %vm1469_vm5, %v3082_v33 }
 0x606   : > { %v2965_v20 = vpop.permute.xlu0 %2964  ;;  %v2944_v47 = vpop.permute.xlu1 %2943 }
 0x607   : > { %v3087_v7 = vmul.f32 %v4216_v21, %v2965_v20  ;;  %v3084_v38 = vmul.f32 %v4217_v25, %v2944_v47 }
 0x609   : > { %3119 = vst.msk [vmem:[%s5382_s26 + $0x80] sm:$0xff] %vm1469_vm5, %v3087_v7  ;;  %3116 = vst.msk [vmem:[%s5382_s26 + $0x68] sm:$0xff] %vm1469_vm5, %v3084_v38 }
 0x60a   : > { %v2979_v54 = vpop.permute.xlu0 %2978  ;;  %v2958_v52 = vpop.permute.xlu1 %2957 }
 0x60b   : > { %v3089_v3 = vmul.f32 %v4218_v11, %v2979_v54  ;;  %v3086_v5 = vmul.f32 %v4219_v4, %v2958_v52 }
 0x60d   : > { %3121 = vst.msk [vmem:[%s5382_s26 + $0x90] sm:$0xff] %vm1469_vm5, %v3089_v3  ;;  %3118 = vst.msk [vmem:[%s5382_s26 + $0x78] sm:$0xff] %vm1469_vm5, %v3086_v5 }
 0x60e   : > { %v2993_v8 = vpop.permute.xlu0 %2992  ;;  %v2972_v40 = vpop.permute.xlu1 %2971 }
 0x60f   : > { %v3091_v37 = vmul.f32 %v4220_v46, %v2993_v8  ;;  %v3088_v43 = vmul.f32 %v4221_v24, %v2972_v40 }
 0x611   : > { %3123 = vst.msk [vmem:[%s5382_s26 + $0xa0] sm:$0xff] %vm1469_vm5, %v3091_v37  ;;  %3120 = vst.msk [vmem:[%s5382_s26 + $0x88] sm:$0xff] %vm1469_vm5, %v3088_v43 }
 0x612   : > { %v3007_v42 = vpop.permute.xlu0 %3006  ;;  %v2986_v55 = vpop.permute.xlu1 %2985 }
 0x613   : > { %v3093_v36 = vmul.f32 %v4222_v14, %v3007_v42  ;;  %v3090_v32 = vmul.f32 %v4223_v51, %v2986_v55 }
 0x615   : > { %3125 = vst.msk [vmem:[%s5382_s26 + $0xb0] sm:$0xff] %vm1469_vm5, %v3093_v36  ;;  %3122 = vst.msk [vmem:[%s5382_s26 + $0x98] sm:$0xff] %vm1469_vm5, %v3090_v32 }
 0x616   : > { %v3021_v0 = vpop.permute.xlu0 %3020  ;;  %v3000_v31 = vpop.permute.xlu1 %2999 }
 0x617   : > { %v3095_v23 = vmul.f32 %v4224_v12, %v3021_v0  ;;  %v3092_v49 = vmul.f32 %v4225_v63, %v3000_v31 }
 0x619   : > { %3127 = vst.msk [vmem:[%s5382_s26 + $0xc0] sm:$0xff] %vm1469_vm5, %v3095_v23  ;;  %3124 = vst.msk [vmem:[%s5382_s26 + $0xa8] sm:$0xff] %vm1469_vm5, %v3092_v49 }
 0x61a   : > { %v3035_v58 = vpop.permute.xlu0 %3034  ;;  %v3014_v1 = vpop.permute.xlu1 %3013 }
 0x61b   : > { %v3097_v48 = vmul.f32 %v4226_v57, %v3035_v58  ;;  %v3094_v34 = vmul.f32 %v4227_v22, %v3014_v1 }
 0x61d   : > { %3129 = vst.msk [vmem:[%s5382_s26 + $0xd0] sm:$0xff] %vm1469_vm5, %v3097_v48  ;;  %3126 = vst.msk [vmem:[%s5382_s26 + $0xb8] sm:$0xff] %vm1469_vm5, %v3094_v34 }
 0x61e   : > { %v3049_v13 = vpop.permute.xlu0 %3048  ;;  %v3028_v44 = vpop.permute.xlu1 %3027 }
 0x61f   : > { %v3099_v39 = vmul.f32 %v4228_v9, %v3049_v13  ;;  %v3096_v17 = vmul.f32 %v4229_v2, %v3028_v44 }
 0x621   : > { %3131 = vst.msk [vmem:[%s5382_s26 + $0xe0] sm:$0xff] %vm1469_vm5, %v3099_v39  ;;  %3128 = vst.msk [vmem:[%s5382_s26 + $0xc8] sm:$0xff] %vm1469_vm5, %v3096_v17 }
 0x622   : > { %v3063_v56 = vpop.permute.xlu0 %3062  ;;  %v3042_v29 = vpop.permute.xlu1 %3041 }
 0x623   : > { %v3101_v53 = vmul.f32 %v4230_v59, %v3063_v56  ;;  %v3098_v35 = vmul.f32 %v4231_v50, %v3042_v29 }
 0x625   : > { %3133 = vst.msk [vmem:[%s5382_s26 + $0xf0] sm:$0xff] %vm1469_vm5, %v3101_v53  ;;  %3130 = vst.msk [vmem:[%s5382_s26 + $0xd8] sm:$0xff] %vm1469_vm5, %v3098_v35 }
 0x626   : > { %v3056_v6 = vpop.permute.xlu1 %3055 }
 0x627   : > { %v3100_v16 = vmul.f32 %v4232_v28, %v3056_v6 }
 0x629   : > { %3132 = vst.msk [vmem:[%s5382_s26 + $0xe8] sm:$0xff] %vm1469_vm5, %v3100_v16 }
 0x62a   : > { %v3070_v61 = vpop.permute.xlu1 %3069 }
 0x62b   : > { %v3102_v27 = vmul.f32 %v4233_v62, %v3070_v61 }
 0x62d   : > { %3134 = vst.msk [vmem:[%s5382_s26 + $0xf8] sm:$0xff] %vm1469_vm5, %v3102_v27 }
 0x62e PF: > { %s26_s29 = sadd.s32 1, %s4240_s29  }
 0x62f   : > { %p23_p5 = scmp.ge.s32.totalorder %s26_s29, 4  }
 0x631   :  { %25 = sbr.rel (!%p23_p5) target bundleno = 3 (0x3), region = 116 }

</bundles_post_ra>
